<compile_context>
chip_gen: v7x
topology: tpu7x:2x2x1
jax: 0.10.0
libtpu: 0.0.40
codegen_flags: <defaults>
</compile_context>

<pallas_src>
import math

import jax
import jax.numpy as jnp
from jax.experimental import pallas as pl
from jax.experimental.pallas import tpu as pltpu


# ----------------------------- Pallas matmul kernel ------------------------

def _row_matmul_kernel(a_ref, b_ref, o_ref):
    # One MXU call per row tile; B (the whole padded K x N matrix) is resident
    # in VMEM (constant-index BlockSpec), so there is no reduction axis, no
    # accumulator scratch and no init/finalize phases.
    o_ref[...] = jnp.dot(
        a_ref[...],
        b_ref[...],
        preferred_element_type=jnp.float32,
        precision=jax.lax.Precision.HIGHEST,
    )


def _round_up(x, m):
    return ((x + m - 1) // m) * m


def pallas_matmul(a, b, *, tm=256,
                  min_flops=1 << 22,
                  max_resident_b_bytes=4 << 20):
    """f32 matmul a @ b with the right operand resident in VMEM.

    Designed for the m = us @ v shape of Orthogonal_matrix: a is (M, K) tall
    and skinny, b is (K, K) small.  Falls back to jnp.dot when the problem is
    too small to amortize the pallas_call launch, or when b would not fit the
    VMEM residency budget.
    """
    M, K = a.shape
    K2, N = b.shape
    assert K == K2, (a.shape, b.shape)
    a = a.astype(jnp.float32)
    b = b.astype(jnp.float32)

    # Lane-dense padding: K (lane dim of the A block / sublane dim of B) and
    # N (lane dim of B and of the output) go up to multiples of 128; M only
    # needs sublane (8) alignment.
    Kp = _round_up(K, 128)
    Np = _round_up(N, 128)
    Mp = _round_up(M, 8)

    # Fallback gates (perf review): tiny problems, or resident B too large.
    if 2 * M * N * K < min_flops or Kp * Np * 4 > max_resident_b_bytes:
        # TODO(synk): a K-tiled 3-D-grid Pallas path could cover very large K;
        # not needed for this module where v is a small (rank x rank) matrix.
        return jnp.dot(a, b, preferred_element_type=jnp.float32,
                       precision=jax.lax.Precision.HIGHEST)

    # Row-tile size: multiple of 8, and split into >= 2 blocks whenever the
    # (padded) M allows it so both v7x TensorCores are used.
    tm = min(tm, Mp)
    if Mp >= 16 and Mp // tm < 2:
        tm = _round_up(Mp // 2, 8)
    Mp = _round_up(Mp, tm)

    if (Mp, Kp) != (M, K):
        a = jnp.pad(a, ((0, Mp - M), (0, Kp - K)))
    if (Kp, Np) != (K, N):
        b = jnp.pad(b, ((0, Kp - K), (0, Np - N)))

    grid = (Mp // tm,)

    out = pl.pallas_call(
        _row_matmul_kernel,
        out_shape=jax.ShapeDtypeStruct((Mp, Np), jnp.float32),
        grid_spec=pltpu.PrefetchScalarGridSpec(
            num_scalar_prefetch=0,
            grid=grid,
            in_specs=[
                # A: one row tile per grid step (double-buffered by Pallas).
                pl.BlockSpec((tm, Kp), lambda i: (i, 0)),
                # B: constant block index -> fetched once, stays in VMEM.
                pl.BlockSpec((Kp, Np), lambda i: (0, 0)),
            ],
            out_specs=pl.BlockSpec((tm, Np), lambda i: (i, 0)),
        ),
        compiler_params=pltpu.CompilerParams(
            # Single row axis is embarrassingly parallel -> megacore sharding
            # on v7x; harmless on single-TC v5e/v6e.
            dimension_semantics=("parallel",),
            # Worst admitted case (Kp=Np=1024, tm=256): resident B 4 MiB (x2
            # buffers) + A/out double buffers ~8 MiB, well under 32 MiB, which
            # itself is safe on v7x (64 MiB physical) and v5e/v6e (128 MiB).
            vmem_limit_bytes=32 * 1024 * 1024,
        ),
    )(a, b)

    if (Mp, Np) != (M, N):
        out = out[:M, :N]
    return out


# ----------------------------- Module port ---------------------------------

def xavier_uniform(key, shape, gain=1.0):
    # Matches torch.nn.init.xavier_uniform_ for 2-D tensors:
    # fan_in = shape[1], fan_out = shape[0]; bound = gain*sqrt(6/(fan_in+fan_out))
    fan_out, fan_in = shape
    bound = gain * math.sqrt(6.0 / (fan_in + fan_out))
    return jax.random.uniform(key, shape, dtype=jnp.float32,
                              minval=-bound, maxval=bound)


class OrthogonalMatrix:
    """JAX/Pallas port of Orthogonal_matrix(m, k)."""

    def __init__(self, m, k, key):
        k_u, k_v, k_m, k_us = jax.random.split(key, 4)
        self.u = xavier_uniform(k_u, (m, k))
        # torch stores integer ones; kept float32 here (s is unused in forward()).
        self.s = jnp.ones((k,), dtype=jnp.float32)
        self.v = xavier_uniform(k_v, (k, k))
        self.m = xavier_uniform(k_m, (m, k))
        self.us = xavier_uniform(k_us, (m, k))

    def forward(self):
        # m = us @ v   (Pallas MXU kernel, resident-B row-tiled matmul,
        # full-f32 products via precision=HIGHEST).
        self.m = pallas_matmul(self.us, self.v)
        # TODO(synk): SVD is an iterative LAPACK-style algorithm with no clean
        # Pallas equivalent; computed with jnp.linalg.svd (reduced, like torch.svd).
        u, s, vh = jnp.linalg.svd(self.m, full_matrices=False)
        self.v = vh.T  # torch.svd returns V, not V^H
        # us = u @ diag(s) == per-column scale; plain jnp so XLA fuses it with
        # the SVD epilogue (a separate pallas_call here is pure overhead).
        self.us = u * s[None, :]
        return self.us


# ----------------------------- Demo / check --------------------------------

if __name__ == "__main__":
    # Small but non-degenerate shapes consistent with the module: M=512 rows,
    # rank K=128 -> the Pallas path is exercised with a 2-block parallel grid
    # (tm=256) and a fully resident 128x128 v matrix.
    M, K = 512, 128
    key = jax.random.PRNGKey(0)
    mod = OrthogonalMatrix(M, K, key)

    us0 = mod.us  # pre-forward state, for the reference
    v0 = mod.v

    out = jax.block_until_ready(mod.forward())

    assert out.shape == (M, K) and out.dtype == jnp.float32

    # 1) Pallas matmul vs XLA reference at matching precision.
    m_ref = jnp.dot(us0, v0, preferred_element_type=jnp.float32,
                    precision=jax.lax.Precision.HIGHEST)
    assert jnp.allclose(mod.m, m_ref, atol=1e-4), "pallas matmul mismatch"

    # 2) Sign-robust SVD semantics checks (SVD columns are defined up to sign):
    #    us @ v^T == m   and   column norms of us == singular values of m.
    recon = out @ mod.v.T
    assert jnp.allclose(recon, m_ref, atol=5e-3, rtol=1e-3), "us @ v^T != m"
    s_ref = jnp.linalg.svd(m_ref, compute_uv=False)
    s_out = jnp.linalg.norm(out, axis=0)
    assert jnp.allclose(jnp.sort(s_out)[::-1], s_ref, atol=5e-3, rtol=1e-3), \
        "singular value mismatch"

    print("KERNEL_OK")
</pallas_src>

<mosaic_0001>
module attributes {stable_mosaic.version = 11 : i64} {
  func.func @_row_matmul_kernel(%arg0: i32, %arg1: memref<256x128xf32, #tpu.memory_space<vmem>>, %arg2: memref<128x128xf32, #tpu.memory_space<vmem>>, %arg3: memref<256x128xf32, #tpu.memory_space<vmem>>) attributes {dimension_semantics = [#tpu.dimension_semantics<parallel>], iteration_bounds = array<i64: 2>, scalar_prefetch = 0 : i64, scratch_operands = 0 : i64, tpu.core_type = #tpu.core_type<tc>, window_params = [{transform_indices = @transform_0, window_bounds = array<i64: 256, 128>}, {pipeline_mode = #tpu.pipeline_mode<synchronous>, transform_indices = @transform_1, window_bounds = array<i64: 128, 128>}, {transform_indices = @transform_2, window_bounds = array<i64: 256, 128>}]} {
    %c0 = arith.constant 0 : index
    %c0_0 = arith.constant 0 : index
    %0 = vector.load %arg1[%c0, %c0_0] : memref<256x128xf32, #tpu.memory_space<vmem>>, vector<256x128xf32>
    %c0_1 = arith.constant 0 : index
    %c0_2 = arith.constant 0 : index
    %1 = vector.load %arg2[%c0_1, %c0_2] : memref<128x128xf32, #tpu.memory_space<vmem>>, vector<128x128xf32>
    %cst = arith.constant dense<0.000000e+00> : vector<256x128xf32>
    %2 = tpu.matmul %0, %1, %cst {dimension_numbers = #tpu.dot_dimension_numbers<[1], [0], [0], [1], [0, 0, 1, 1], [], []>, precision = #tpu.contract_precision<fp32>} : vector<256x128xf32>, vector<128x128xf32>, vector<256x128xf32> -> vector<256x128xf32>
    %c0_3 = arith.constant 0 : index
    %c0_4 = arith.constant 0 : index
    %3 = vector.load %arg3[%c0_3, %c0_4] : memref<256x128xf32, #tpu.memory_space<vmem>>, vector<256x128xf32>
    tpu.vector_store %arg3[%c0_3, %c0_4], %2 {strides = array<i32>} : memref<256x128xf32, #tpu.memory_space<vmem>>, vector<256x128xf32>,
    return
  }
  func.func @transform_0(%arg0: i32) -> (i32, i32) {
    %c0_i32 = arith.constant 0 : i32
    %c0_i32_0 = arith.constant 0 : i32
    return %arg0, %c0_i32 : i32, i32
  }
  func.func @transform_1(%arg0: i32) -> (i32, i32) {
    %c0_i32 = arith.constant 0 : i32
    %c0_i32_0 = arith.constant 0 : i32
    %c0_i32_1 = arith.constant 0 : i32
    return %c0_i32, %c0_i32_0 : i32, i32
  }
  func.func @transform_2(%arg0: i32) -> (i32, i32) {
    %c0_i32 = arith.constant 0 : i32
    %c0_i32_0 = arith.constant 0 : i32
    return %arg0, %c0_i32 : i32, i32
  }
}

</mosaic_0001>

<bundles_post_ra>
// kernel: tpu_custom_call.1
= control target key start
LH: loop header
LB: loop body
LE: loop exit
PB: predicated region body
PF: predicated region fallthrough
CT: control target
= control target key end

     0   :  { %7 = vsyncpa [#allocation3], 0  ;;  %s4729_s0 = inlined_call_operand.hbm [shape: f32[512,128], index: 0, kind: input, shape index: {}]   ;;  %s4730_s1 = inlined_call_operand.hbm [shape: f32[128,128], index: 1, kind: input, shape index: {}]   ;;  %s4731_s2 = inlined_call_operand.hbm [shape: f32[512,128], index: 2, kind: output, shape index: {}]  }
   0x1   :  { %9 = vsyncpa [#allocation3 + $0x1], 0 }
   0x2   :  { %10 = vsyncpa [#allocation6], 0 }
   0x3   :  { %11 = vsyncpa [#allocation4], 0 }
   0x4   :  { %13 = vsyncpa [#allocation4 + $0x1], 0  ;;  %s3681_s9 = smov 0   ;;  %s3683_s10 = smov 0  }
   0x5   :  { %s3685_s11 = smov 0   ;;  %s3687_s12 = smov 0  }
   0x6 LB: > { %s3702_s13 = sadd.s32 4294967295, %s3657_s12   ;;  %s2330_s14 = sadd.s32 4294967294, %s3657_s12   ;;  %s3657_s12 = sphi %s3687_s12, %s4937_s12   ;;  %s3653_s11 = sphi %s3685_s11, %s4936_s11   ;;  %s3649_s10 = sphi %s3683_s10, %s4935_s10   ;;  %s3645_s9 = sphi %s3681_s9, %s4934_s9  }
   0x7   : > { %p39_p0 = scmp.ne.s32.totalorder %s3649_s10, %s3645_s9  ;;  %p4732_p1 = scmp.eq.s32.totalorder %s3702_s13, 0 }
   0x8   : > { %p90_p3 = scmp.eq.s32.totalorder %s2330_s14, 1  ;;  %p2331_p5 = scmp.ge.s32.totalorder %s3657_s12, 1 }
   0x9   : > { %p3711_p4 = por %p4732_p1, %p39_p0  ;;  %p97_p7 = scmp.lt.s32.totalorder %s3657_s12, 3 }
   0xa   : > { %p3716_p6 = por %p90_p3, %p39_p0  ;;  %s3659_s18 = smov [#allocation5]  }
   0xb   : > { %s4800_s15 = scalar_select %p3711_p4, 1, 0 }
   0xc   : > { %s4801_s16 = scalar_select %p3716_p6, 1, 0 }
   0xd   : > { %p3721_p8 = pnand %p2331_p5, %p97_p7  ;;  %s109_s19 = sshll.u32 %s3659_s18, 4  ;;  %s3725_s19 = int_to_ptr.vmem [resolvable:$true] %s109_s19 }
   0xe   : > { %s3737_s21 = sadd.s32 1, %s3657_s12   ;;  %s26_s22 = sadd.s32 1, %s3653_s11 }
   0xf   : > { %s4802_s17 = scalar_select %p3721_p8, 1, 0 }
  0x10   : > { %p3476_p9 = pneg %p3721_p8  ;;  %s23_s23 = ssub.s32 %s3657_s12, %s3737_s21 }
  0x11   : > { %s3529_s26 = scalar_lea.hbm %s4730_s1, 2048 }
  0x12   : > { %p3732_p11 = pnand %p3476_p9, %p4732_p1  ;;  %p3530_p12 = scmp.ne.s32.totalorder %s4730_s1, %s3529_s26 }
  0x13   : > { %p3536_p5 = scmp.lt.u32.totalorder %s3529_s26, %s4730_s1 }
  0x14   : > { %p3531_p13 = pneg %p3732_p11 }
  0x16   : > { %p3532_p0 = pnand %p3531_p13, %p3530_p12 }
  0x18   : > { %p3533_p3 = pneg %p3532_p0 }
  0x1a   : > { %p3538_p7 = pnand %p3536_p5, %p3533_p3 }
  0x1c   : > { %3541 = shalt.err (!%p3538_p7)
}
  0x1d   : > { %s3542_s3 = scalar_lea.vmem %s3725_s19, 2048  ;;  %p3550_p2 = scmp.lt.s32.totalorder %s3725_s19, %s3725_s19 }
  0x1e   : > { %p3543_p9 = scmp.ne.s32.totalorder %s3725_s19, %s3542_s3  ;;  %p3551_p6 = scmp.lt.s32.totalorder %s3542_s3, %s3542_s3 }
  0x20   : > { %p3545_p10 = pnand %p3543_p9, %p3531_p13  ;;  %p3552_p4 = por %p3551_p6, %p3550_p2 }
  0x22   : > { %p3546_p1 = pneg %p3545_p10 }
  0x24   : > { %p3553_p8 = pnand %p3552_p4, %p3546_p1 }
  0x26   : > { %3556 = shalt.err (!%p3553_p8)
}
  0x27   : > { %s3660_s4 = smov 128   ;;  %s3661_s5 = smov 8  }
  0x28   : > { %3479 = dma.hbm_to_vmem [thread:$0]  (!%p3732_p11), %s4730_s1, 2048, %s3725_s19, [#allocation6], %s3660_s4, %s3660_s4, %s3661_s5  }
  0x29   : > { %p24_p1 = scmp.eq.s32.totalorder %s23_s23, 0  ;;  %p33_p2 = scmp.ne.s32.totalorder %s3653_s11, %s3649_s10 }
  0x2a   : > { %p34_p4 = scmp.eq.s32.totalorder %s3657_s12, 0  ;;  %p3489_p6 = scmp.lt.s32.totalorder %s3657_s12, 2 }
  0x2b   : > { %s3771_s8 = scalar_select %p24_p1, %s3653_s11, %s26_s22  }
  0x2c   : > { %p35_p8 = por %p34_p4, %p33_p2  ;;  %p4804_p10 = scmp.eq.s32.totalorder %s3702_s13, 1 }
  0x2d   : > { %s123_s18 = sand.u32 1, %s3653_s11   ;;  %s2346_s20 = sshll.u32 %s3657_s12, 12 }
  0x2e   : > { %p3775_p12 = por %p4804_p10, %p33_p2  ;;  %s2334_s24 = sshll.u32 %s123_s18, 8 }
  0x2f   : > { %s3784_s27 = scalar_lea.hbm %s4729_s0, %s2346_s20  ;;  %s127_s19 = scalar_lea.vmem [#allocation2], %s2334_s24 }
  0x30   : > { %s134_s22 = sshll.u32 %s127_s19, 4  ;;  %p3786_p11 = pnand %p3489_p6, %p35_p8  ;;  %s3790_s22 = int_to_ptr.vmem [resolvable:$true] %s134_s22 }
  0x31   : > { %s3792_s28 = scalar_lea.sflag [#allocation3], %s123_s18  ;;  %s3557_s29 = scalar_lea.hbm %s3784_s27, 4096 }
  0x32   : > { %p3558_p13 = scmp.ne.s32.totalorder %s3784_s27, %s3557_s29  ;;  %p3559_p0 = pneg %p3786_p11 }
  0x33   : > { %s3562_s6 = scalar_lea.hbm %s4729_s0, 8192  ;;  %p3563_p7 = scmp.lt.u32.totalorder %s3784_s27, %s4729_s0 }
  0x34   : > { %p3560_p3 = pnand %p3559_p0, %p3558_p13  ;;  %p3564_p9 = scmp.lt.u32.totalorder %s3562_s6, %s3557_s29 }
  0x35   : > { %p3566_p2 = scmp.lt.u32.totalorder %s3557_s29, %s3784_s27 }
  0x36   : > { %p3561_p5 = pneg %p3560_p3  ;;  %p3565_p1 = por %p3564_p9, %p3563_p7 }
  0x38   : > { %p3567_p4 = por %p3566_p2, %p3565_p1 }
  0x3a   : > { %p3568_p6 = pnand %p3567_p4, %p3561_p5 }
  0x3c   : > { %3571 = shalt.err (!%p3568_p6)
}
  0x3d   : > { %s3572_s18 = scalar_lea.vmem %s3790_s22, 4096  ;;  %s3662_s24 = smov [#allocation2]  }
  0x3e   : > { %p3573_p8 = scmp.ne.s32.totalorder %s3790_s22, %s3572_s18  ;;  %s3577_s25 = sshll.u32 %s3662_s24, 4  ;;  %s3578_s25 = int_to_ptr.vmem [resolvable:$false] %s3577_s25 }
  0x3f   : > { %s3579_s26 = scalar_lea.vmem %s3578_s25, 8192  ;;  %p3580_p3 = scmp.lt.s32.totalorder %s3790_s22, %s3578_s25 }
  0x40   : > { %p3575_p10 = pnand %p3573_p8, %p3559_p0  ;;  %p3581_p7 = scmp.lt.s32.totalorder %s3579_s26, %s3572_s18 }
  0x42   : > { %p3576_p13 = pneg %p3575_p10  ;;  %p3582_p9 = por %p3581_p7, %p3580_p3 }
  0x44   : > { %p3583_p1 = pnand %p3582_p9, %p3576_p13 }
  0x46   : > { %3586 = shalt.err (!%p3583_p1)
}
  0x47   : > { %3483 = dma.hbm_to_vmem [thread:$0]  (!%p3786_p11), %s3784_s27, 4096, %s3790_s22, %s3792_s28, %s3660_s4, %s3660_s4, %s3661_s5  }
  0x48   : > { %p4807_p0 = scmp.ne.s32.totalorder %s4802_s17, 0 }
  0x4a   : > { %146 = sbr.rel (%p4807_p0) target bundleno = 548 (0x224), region = 28 }
  0x51   : > { %s3826_s19 = sand.u32 1, %s3649_s10   ;;  %p4808_p5 = scmp.ne.s32.totalorder %s4800_s15, 0 }
  0x52   : > { %s2338_s29 = sshll.u32 %s3826_s19, 8  ;;  %s149_s30 = scalar_lea.sflag [#allocation3], %s3826_s19 }
  0x53   : > { %s3832_s23 = scalar_lea.vmem [#allocation2], %s2338_s29 }
  0x54   : > { %3632 = dma.done.wait (%p4808_p5), %s149_s30, 4096  }
  0x55   : > { %3634 = vsyncadd (%p4808_p5), %s149_s30, 4294963200  ;;  %p4809_p11 = scmp.eq.s32.totalorder %s3702_s13, 0 }
  0x57   : > { %3636 = dma.done.wait (%p4809_p11), [#allocation6], 2048   ;;  %p4810_p2 = pmov %p4809_p11 }
  0x58   : > { %v211_v0 = vld [vmem:[#allocation5] sm:$0xff]  ;;  %v212_v1 = vld [vmem:[#allocation5 + $0x8] sm:$0xff]  ;;  %v3842_v2 = vld [vmem:[#allocation5 + $0x10] sm:$0xff]  ;;  %s4644_s15 = scalar_lea.vmem [#allocation7], %s2338_s29  ;;  %s2347_s17 = sshll.u32 %s3702_s13, 12 }
  0x59   : > { %3638 = vsyncadd (%p4810_p2), [#allocation6], 4294965248  ;;  %v228_v3 = vand.u32 4294901760, %v211_v0  ;;  %v231_v4 = vand.u32 4294901760, %v212_v1  ;;  %v3844_v5 = vld [vmem:[#allocation5 + $0x18] sm:$0xff]  ;;  %v234_v6 = vand.u32 4294901760, %v3842_v2  ;;  %s4681_s22 = scalar_lea.hbm %s4731_s2, %s2347_s17 }
  0x5a   : > { %v3847_v7 = vld [vmem:[#allocation5 + $0x20] sm:$0xff]  ;;  %v3849_v8 = vld [vmem:[#allocation5 + $0x28] sm:$0xff]  ;;  %v237_v9 = vand.u32 4294901760, %v3844_v5  ;;  %v3862_v14 = vld [vmem:[#allocation5 + $0x30] sm:$0xff]  ;;  %s2247_s4 = sshll.u32 %s4644_s15, 4  ;;  %s2234_s13 = scalar_lea.sflag [#allocation4], %s3826_s19  ;;  %s4683_s4 = int_to_ptr.vmem [resolvable:$true] %s2247_s4 }
  0x5b   : > { %v3852_v10 = vpack.c.bf16 %v231_v4, %v228_v3  ;;  %v240_v11 = vand.u32 4294901760, %v3847_v7  ;;  %v243_v12 = vand.u32 4294901760, %v3849_v8  ;;  %v3864_v15 = vld [vmem:[#allocation5 + $0x38] sm:$0xff]  ;;  %v179_v16 = vld [vmem:[%s3832_s23] sm:$0xff]  ;;  %v246_v19 = vand.u32 4294901760, %v3862_v14  ;;  %v3885_v22 = vld [vmem:[#allocation5 + $0x48] sm:$0xff] }
  0x5c   : > { %v3860_v13 = vpack.c.bf16 %v237_v9, %v234_v6  ;;  %v3871_v17 = vand.u32 4294901760, %v179_v16  ;;  %v249_v20 = vand.u32 4294901760, %v3864_v15  ;;  %v3883_v21 = vld [vmem:[#allocation5 + $0x40] sm:$0xff]  ;;  %v180_v25 = vld [vmem:[%s3832_s23 + $0x8] sm:$0xff]  ;;  %v4742_v28 = vand.u32 4294901760, %v3885_v22  ;;  %v3904_v29 = vld [vmem:[#allocation5 + $0x50] sm:$0xff] }
  0x5d   : > { %3117 = vmatprep.subr.bf16.mxu1 %v3852_v10  ;;  %3213 = vmatprep.subr.bf16.mxu0 %v3852_v10  ;;  %v3879_v18 = vpack.c.bf16 %v243_v12, %v240_v11  ;;  %v4743_v27 = vand.u32 4294901760, %v3883_v21  ;;  %v3906_v30 = vld [vmem:[#allocation5 + $0x58] sm:$0xff]  ;;  %v181_v32 = vld [vmem:[%s3832_s23 + $0x10] sm:$0xff]  ;;  %v3910_v33 = vand.u32 4294901760, %v180_v25  ;;  %v4740_v35 = vand.u32 4294901760, %v3904_v29  ;;  %v3917_v37 = vld [vmem:[#allocation5 + $0x60] sm:$0xff] }
  0x5e   : > { %3119 = vmatpush3.bf16.msra.mxu1 %v3852_v10  ;;  %3215 = vmatpush3.bf16.msra.mxu0 %v3852_v10  ;;  %v3888_v23 = vsub.f32 %v179_v16, %v3871_v17  ;;  %v3900_v26 = vpack.c.bf16 %v249_v20, %v246_v19  ;;  %v182_v34 = vld [vmem:[%s3832_s23 + $0x18] sm:$0xff]  ;;  %v4739_v36 = vand.u32 4294901760, %v3906_v30  ;;  %v3919_v39 = vsub.f32 %v211_v0, %v228_v3  ;;  %v3929_v41 = vld [vmem:[#allocation5 + $0x68] sm:$0xff]  ;;  %v183_v44 = vld [vmem:[%s3832_s23 + $0x20] sm:$0xff]  ;;  %s3587_s28 = scalar_lea.vmem %s4683_s4, 4096  ;;  %s3663_s3 = smov [#allocation7]  }
  0x5f   : > { %3121 = vmatprep.subr.bf16.mxu1 %v3860_v13  ;;  %3217 = vmatprep.subr.bf16.mxu0 %v3860_v13  ;;  %v3927_v40 = vpack.c.bf16 %v4742_v28, %v4743_v27  ;;  %v3931_v42 = vsub.f32 %v212_v1, %v231_v4  ;;  %v3933_v43 = vand.u32 4294901760, %v181_v32  ;;  %v3936_v45 = vand.u32 4294901760, %v182_v34  ;;  %v3939_v47 = vld [vmem:[#allocation5 + $0x70] sm:$0xff]  ;;  %v3941_v48 = vld [vmem:[#allocation5 + $0x78] sm:$0xff]  ;;  %v184_v56 = vld [vmem:[%s3832_s23 + $0x28] sm:$0xff]  ;;  %p3588_p4 = scmp.ne.s32.totalorder %s4683_s4, %s3587_s28  ;;  %s3591_s6 = sshll.u32 %s3663_s3, 4  ;;  %s3592_s6 = int_to_ptr.vmem [resolvable:$false] %s3591_s6 }
  0x60   : > { %4811 = vst [vmem:[#allocation11_spill] sm:$0xff] %v3888_v23  ;;  %v310_v24 = vand.u32 4294901760, %v3888_v23  ;;  %4812 = vst [vmem:[#allocation12_spill] sm:$0xff] %v3900_v26  ;;  %v4738_v46 = vand.u32 4294901760, %v3917_v37  ;;  %v3944_v49 = vsub.f32 %v180_v25, %v3910_v33  ;;  %v3952_v50 = vpack.c.bf16 %v4739_v36, %v4740_v35  ;;  %v185_v3 = vld [vmem:[%s3832_s23 + $0x30] sm:$0xff]  ;;  %v186_v4 = vld [vmem:[%s3832_s23 + $0x38] sm:$0xff]  ;;  %p3594_p10 = scmp.lt.s32.totalorder %s4683_s4, %s3592_s6 }
  0x61   : > { %4813 = vst [vmem:[#allocation13_spill] sm:$0xff] %v3927_v40  ;;  %v4737_v51 = vand.u32 4294901760, %v3929_v41  ;;  %v631_v52 = vand.u32 4294901760, %v3919_v39  ;;  %v3956_v53 = vand.u32 4294901760, %v183_v44  ;;  %v638_v54 = vand.u32 4294901760, %v3931_v42  ;;  %p3589_p6 = pnand %p3588_p4, %p3775_p12  ;;  %s3593_s7 = scalar_lea.vmem %s3592_s6, 8192 }
  0x62   : > { %3123 = vmatpush3.bf16.msra.mxu1 %v3860_v13  ;;  %3219 = vmatpush3.bf16.msra.mxu0 %v3860_v13  ;;  %v311_v31 = vsub.f32 %v3888_v23, %v310_v24  ;;  %4814 = vst [vmem:[#allocation14_spill] sm:$0xff] %v3944_v49  ;;  %4815 = vst [vmem:[#allocation15_spill] sm:$0xff] %v3952_v50  ;;  %v3962_v55 = vsub.f32 %v181_v32, %v3933_v43  ;;  %v4736_v59 = vand.u32 4294901760, %v3939_v47  ;;  %v190_v23 = vld [vmem:[%s3832_s23 + $0x58] sm:$0xff]  ;;  %p3595_p13 = scmp.lt.s32.totalorder %s3593_s7, %s3587_s28 }
  0x63   : > { %3125 = vmatprep.subr.bf16.mxu1 %v3879_v18  ;;  %3221 = vmatprep.subr.bf16.mxu0 %v3879_v18  ;;  %v3968_v57 = vsub.f32 %v3842_v2, %v234_v6  ;;  %v3973_v58 = vsub.f32 %v3844_v5, %v237_v9  ;;  %v4735_v60 = vand.u32 4294901760, %v3941_v48  ;;  %v3978_v61 = vsub.f32 %v182_v34, %v3936_v45  ;;  %p3590_p8 = pneg %p3589_p6 }
  0x64   : > { %2908 = vmatprep.mubr.f32.mxu0 %v310_v24  ;;  %v312_v38 = vand.u32 4294901760, %v311_v31  ;;  %4816 = vst [vmem:[#allocation16_spill] sm:$0xff] %v3962_v55  ;;  %v4745_v62 = vand.u32 4294901760, %v3944_v49  ;;  %v3987_v63 = vpack.c.bf16 %v4737_v51, %v4738_v46  ;;  %v632_v0 = vsub.f32 %v3919_v39, %v631_v52  ;;  %v187_v24 = vld [vmem:[%s3832_s23 + $0x40] sm:$0xff]  ;;  %v188_v51 = vld [vmem:[%s3832_s23 + $0x48] sm:$0xff]  ;;  %p3596_p3 = por %p3595_p13, %p3594_p10 }
  0x65   : > { %4817 = vst [vmem:[#allocation17_spill] sm:$0xff] %v3978_v61  ;;  %v3991_v1 = vsub.f32 %v183_v44, %v3956_v53  ;;  %v3993_v2 = vand.u32 4294901760, %v184_v56  ;;  %v639_v5 = vsub.f32 %v3931_v42, %v638_v54  ;;  %v4741_v6 = vand.u32 4294901760, %v3962_v55 }
  0x66   : > { %3127 = vmatpush3.bf16.msra.mxu1 %v3879_v18  ;;  %3223 = vmatpush3.bf16.msra.mxu0 %v3879_v18  ;;  %4818 = vst [vmem:[#allocation18_spill] sm:$0xff] %v3987_v63  ;;  %v4747_v9 = vand.u32 4294901760, %v3968_v57  ;;  %v4746_v16 = vand.u32 4294901760, %v3973_v58  ;;  %v4008_v25 = vpack.c.bf16 %v4735_v60, %v4736_v59  ;;  %v4744_v31 = vand.u32 4294901760, %v3978_v61  ;;  %p3597_p7 = pnand %p3596_p3, %p3590_p8 }
  0x67   : > { %3129 = vmatprep.subr.bf16.mxu1 %v3900_v26  ;;  %3225 = vmatprep.subr.bf16.mxu0 %v3900_v26  ;;  %4819 = vst [vmem:[#allocation19_spill] sm:$0xff] %v3991_v1  ;;  %4820 = vst [vmem:[#allocation20_spill] sm:$0xff] %v3993_v2  ;;  %v4014_v32 = vsub.f32 %v3847_v7, %v240_v11  ;;  %v4019_v34 = vsub.f32 %v3849_v8, %v243_v12  ;;  %v4028_v60 = vand.u32 4294901760, %v185_v3 }
  0x68   : > { %2668 = vmatprep.mubr.f32.mxu1 %v312_v38  ;;  %4821 = vst [vmem:[#allocation21_spill] sm:$0xff] %v4008_v25  ;;  %v4024_v38 = vsub.f32 %v3944_v49, %v4745_v62  ;;  %v4026_v44 = vpack.c.bf16 %v638_v54, %v631_v52  ;;  %v4030_v59 = vand.u32 4294901760, %v186_v4  ;;  %v633_v7 = vand.u32 4294901760, %v632_v0 }
  0x69   : > { %4822 = vst [vmem:[#allocation22_spill] sm:$0xff] %v4028_v60  ;;  %v4748_v11 = vand.u32 4294901760, %v3991_v1  ;;  %v4036_v8 = vsub.f32 %v184_v56, %v3993_v2  ;;  %v4038_v12 = vand.u32 4294901760, %v187_v24  ;;  %v640_v52 = vand.u32 4294901760, %v639_v5 }
  0x6a   : > { %3131 = vmatpush3.bf16.msra.mxu1 %v3900_v26  ;;  %3227 = vmatpush3.bf16.msra.mxu0 %v3900_v26  ;;  %4823 = vst [vmem:[#allocation23_spill] sm:$0xff] %v4030_v59  ;;  %v4046_v54 = vsub.f32 %v3962_v55, %v4741_v6  ;;  %v646_v0 = vsub.f32 %v3968_v57, %v4747_v9  ;;  %v659_v5 = vand.u32 4294901760, %v4014_v32  ;;  %v666_v36 = vand.u32 4294901760, %v4019_v34 }
  0x6b   : > { %3133 = vmatprep.subr.bf16.mxu1 %v3927_v40  ;;  %3229 = vmatprep.subr.bf16.mxu0 %v3927_v40  ;;  %4824 = vst [vmem:[#allocation24_spill] sm:$0xff] %v4036_v8  ;;  %4825 = vst [vmem:[#allocation25_spill] sm:$0xff] %v4038_v12  ;;  %v653_v56 = vsub.f32 %v3973_v58, %v4746_v16  ;;  %v4057_v46 = vsub.f32 %v3978_v61, %v4744_v31  ;;  %v4072_v27 = vand.u32 4294901760, %v188_v51 }
  0x6c   : > { %v4064_v35 = vsub.f32 %v3862_v14, %v246_v19  ;;  %v4067_v6 = vsub.f32 %v185_v3, %v4028_v60  ;;  %v4070_v28 = vsub.f32 %v186_v4, %v4030_v59  ;;  %v4077_v31 = vsub.f32 %v3864_v15, %v249_v20 }
  0x6d   : > { %4828 = vst [vmem:[#allocation28_spill] sm:$0xff] %v4072_v27  ;;  %v322_v14 = vand.u32 4294901760, %v4024_v38  ;;  %v4085_v19 = vsub.f32 %v3991_v1, %v4748_v11  ;;  %v4089_v4 = vsub.f32 %v187_v24, %v4038_v12  ;;  %v3148_v15 = vpack.c.bf16 %v640_v52, %v633_v7  ;;  %v189_v38 = vld [vmem:[%s3832_s23 + $0x50] sm:$0xff] }
  0x6e   : > { %3135 = vmatpush3.bf16.msra.mxu1 %v3927_v40  ;;  %3231 = vmatpush3.bf16.msra.mxu0 %v3927_v40  ;;  %4826 = vst [vmem:[#allocation26_spill] sm:$0xff] %v4067_v6  ;;  %4827 = vst [vmem:[#allocation27_spill] sm:$0xff] %v4070_v28  ;;  %v332_v20 = vand.u32 4294901760, %v4046_v54  ;;  %v647_v62 = vand.u32 4294901760, %v646_v0  ;;  %v654_v16 = vand.u32 4294901760, %v653_v56  ;;  %v660_v9 = vsub.f32 %v4014_v32, %v659_v5  ;;  %v192_v40 = vld [vmem:[%s3832_s23 + $0x68] sm:$0xff] }
  0x6f   : > { %3137 = vmatprep.subr.bf16.mxu1 %v3952_v50  ;;  %3233 = vmatprep.subr.bf16.mxu0 %v3952_v50  ;;  %4829 = vst [vmem:[#allocation29_spill] sm:$0xff] %v4089_v4  ;;  %v667_v11 = vsub.f32 %v4019_v34, %v666_v36  ;;  %v4105_v54 = vsub.f32 %v188_v51, %v4072_v27  ;;  %v352_v0 = vand.u32 4294901760, %v4085_v19  ;;  %v4831_v56 = vand.u32 4294901760, %v4036_v8 }
  0x70   : > { %v4116_v3 = vand.u32 4294901760, %v189_v38  ;;  %v3152_v51 = vpack.c.bf16 %v654_v16, %v647_v62  ;;  %v4833_v52 = vand.u32 4294901760, %v3968_v57  ;;  %v4834_v7 = vand.u32 4294901760, %v3973_v58 }
  0x71   : > { %4830 = vst [vmem:[#allocation30_spill] sm:$0xff] %v4105_v54  ;;  %v4113_v24 = vsub.f32 %v4036_v8, %v4831_v56  ;;  %v4123_v27 = vand.u32 4294901760, %v190_v23  ;;  %v661_v56 = vand.u32 4294901760, %v660_v9  ;;  %v668_v12 = vand.u32 4294901760, %v667_v11 }
  0x72   : > { %3139 = vmatpush3.bf16.msra.mxu1 %v3952_v50  ;;  %3235 = vmatpush3.bf16.msra.mxu0 %v3952_v50  ;;  %v342_v50 = vand.u32 4294901760, %v4057_v46  ;;  %4832 = vst [vmem:[#allocation31_spill] sm:$0xff] %v4116_v3  ;;  %v4835_v46 = vand.u32 4294901760, %v4064_v35  ;;  %v4836_v26 = vand.u32 4294901760, %v4077_v31  ;;  %v4837_v16 = vand.u32 4294901760, %v3944_v49 }
  0x73   : > { %3141 = vmatprep.subr.bf16.mxu1 %v3987_v63  ;;  %3237 = vmatprep.subr.bf16.mxu0 %v3987_v63  ;;  %v4839_v60 = vand.u32 4294901760, %v4070_v28  ;;  %v4844_v11 = vand.u32 4294901760, %v3885_v22 }
  0x74   : > { %v674_v59 = vsub.f32 %v4064_v35, %v4835_v46  ;;  %v681_v62 = vsub.f32 %v4077_v31, %v4836_v26  ;;  %v4840_v46 = vand.u32 4294901760, %v3883_v21  ;;  %v4841_v26 = vand.u32 4294901760, %v4089_v4 }
  0x75   : > { %v4142_v9 = vsub.f32 %v4070_v28, %v4839_v60  ;;  %v4159_v60 = vand.u32 4294901760, %v192_v40  ;;  %v4165_v49 = vsub.f32 %v3885_v22, %v4844_v11  ;;  %v4848_v11 = vand.u32 4294901760, %v3978_v61 }
  0x76   : > { %3143 = vmatpush3.bf16.msra.mxu1 %v3987_v63  ;;  %3239 = vmatpush3.bf16.msra.mxu0 %v3987_v63  ;;  %v191_v63 = vld [vmem:[%s3832_s23 + $0x60] sm:$0xff]  ;;  %v4148_v2 = vsub.f32 %v3883_v21, %v4840_v46  ;;  %v4845_v21 = vand.u32 4294901760, %v3962_v55  ;;  %v682_v22 = vand.u32 4294901760, %v681_v62  ;;  %v194_v62 = vld [vmem:[%s3832_s23 + $0x78] sm:$0xff]  ;;  %v4854_v61 = vand.u32 4294901760, %v4077_v31 }
  0x77   : > { %3145 = vmatprep.subr.bf16.mxu1 %v4008_v25  ;;  %3241 = vmatprep.subr.bf16.mxu0 %v4008_v25  ;;  %v4125_v19 = vand.u32 4294901760, %v191_v63  ;;  %4843 = vst [vmem:[#allocation33_spill] sm:$0xff] %v4159_v60 }
  0x79   : > { %v4173_v46 = vsub.f32 %v191_v63, %v4125_v19 }
  0x7a   : > { %3147 = vmatpush3.bf16.msra.mxu1 %v4008_v25  ;;  %3243 = vmatpush3.bf16.msra.mxu0 %v4008_v25  ;;  %v3248_v25 = vpack.c.bf16 %v4834_v7, %v4833_v52  ;;  %v4838_v7 = vand.u32 4294901760, %v4067_v6 }
  0x7b   : > { %3149 = vmatprep.subr.bf16.mxu1 %v3148_v15  ;;  %3245 = vmatprep.subr.bf16.mxu0 %v4026_v44  ;;  %4847 = vst [vmem:[#allocation35_spill] sm:$0xff] %v4173_v46 }
  0x7c   : > { %v371_v52 = vsub.f32 %v4067_v6, %v4838_v7  ;;  %v193_v7 = vld [vmem:[%s3832_s23 + $0x70] sm:$0xff] }
  0x7d   : > { %2669 = vmatmul.mubr.f32.vlgmr.msra.gmra.mrb[0].mxu1 %v322_v14  ;;  %2909 = vmatmul.mubr.f32.vlgmr.msra.gmra.mrb[0].mxu0 %v4837_v16  ;;  %v4154_v14 = vsub.f32 %v4089_v4, %v4841_v26  ;;  %v4157_v16 = vsub.f32 %v189_v38, %v4116_v3  ;;  %v687_v38 = vand.u32 4294901760, %v4148_v2  ;;  %v3156_v26 = vpack.c.bf16 %v668_v12, %v661_v56 }
  0x7e   : > { %3151 = vmatpush3.bf16.msra.mxu1 %v3148_v15  ;;  %3247 = vmatpush3.bf16.msra.mxu0 %v4026_v44  ;;  %v3252_v44 = vpack.c.bf16 %v666_v36, %v659_v5  ;;  %v4170_v15 = vsub.f32 %v190_v23, %v4123_v27  ;;  %v675_v3 = vand.u32 4294901760, %v674_v59  ;;  %v362_v23 = vand.u32 4294901760, %v4113_v24 }
  0x7f   : > { %4842 = vst [vmem:[#allocation32_spill] sm:$0xff] %v4157_v16  ;;  %2671 = vmatprep.mubr.f32.mxu1 %v332_v20  ;;  %2911 = vmatprep.mubr.f32.mxu0 %v4845_v21  ;;  %v694_v20 = vand.u32 4294901760, %v4165_v49  ;;  %v372_v36 = vand.u32 4294901760, %v371_v52  ;;  %v4180_v63 = vand.u32 4294901760, %v193_v7  ;;  %v688_v5 = vsub.f32 %v4148_v2, %v687_v38 }
  0x80   : > { %4846 = vst [vmem:[#allocation34_spill] sm:$0xff] %v4170_v15  ;;  %3153 = vmatprep.subr.bf16.mxu1 %v3152_v51  ;;  %3249 = vmatprep.subr.bf16.mxu0 %v3248_v25  ;;  %v4850_v12 = vand.u32 4294901760, %v3991_v1  ;;  %v4851_v59 = vand.u32 4294901760, %v4105_v54  ;;  %v4192_v24 = vsub.f32 %v192_v40, %v4159_v60  ;;  %v392_v21 = vand.u32 4294901760, %v4154_v14  ;;  %v196_v1 = vld [vmem:[%s3832_s23 + $0x88] sm:$0xff] }
  0x81   : > { %2672 = vmatmul.mubr.f32.gmra.mrb[2].mxu1 %v342_v50  ;;  %2912 = vmatmul.mubr.f32.gmra.mrb[2].mxu0 %v4848_v11  ;;  %4849 = vst [vmem:[#allocation36_spill] sm:$0xff] %v4180_v63  ;;  %v695_v52 = vsub.f32 %v4165_v49, %v694_v20  ;;  %v3160_v40 = vpack.c.bf16 %v682_v22, %v675_v3  ;;  %v4853_v56 = vand.u32 4294901760, %v4064_v35  ;;  %v197_v11 = vld [vmem:[%s3832_s23 + $0x90] sm:$0xff]  ;;  %v4856_v60 = vand.u32 4294901760, %v3904_v29 }
  0x82   : > { %2674 = vmatprep.mubr.f32.mxu1 %v352_v0  ;;  %2914 = vmatprep.mubr.f32.mxu0 %v4850_v12  ;;  %v4188_v50 = vsub.f32 %v4105_v54, %v4851_v59  ;;  %4852 = vst [vmem:[#allocation37_spill] sm:$0xff] %v4192_v24  ;;  %v382_v0 = vand.u32 4294901760, %v4142_v9  ;;  %v195_v59 = vld [vmem:[%s3832_s23 + $0x80] sm:$0xff]  ;;  %v4855_v9 = vand.u32 4294901760, %v4036_v8  ;;  %v4209_v14 = vsub.f32 %v193_v7, %v4180_v63 }
  0x83   : > { %3155 = vmatpush3.bf16.msra.mxu1 %v3152_v51  ;;  %3251 = vmatpush3.bf16.msra.mxu0 %v3248_v25  ;;  %v3256_v51 = vpack.c.bf16 %v4854_v61, %v4853_v56  ;;  %v689_v25 = vand.u32 4294901760, %v688_v5  ;;  %v696_v55 = vand.u32 4294901760, %v695_v52  ;;  %v4211_v12 = vand.u32 4294901760, %v194_v62 }
  0x84   : > { %3157 = vmatprep.subr.bf16.mxu1 %v3156_v26  ;;  %3253 = vmatprep.subr.bf16.mxu0 %v3252_v44  ;;  %v4217_v3 = vsub.f32 %v3904_v29, %v4856_v60  ;;  %v4857_v22 = vand.u32 4294901760, %v3906_v30  ;;  %v4859_v7 = vand.u32 4294901760, %v4157_v16  ;;  %v4230_v52 = vand.u32 4294901760, %v195_v59 }
  0x85   : > { %2675 = vmatmul.mubr.f32.gmra.mrb[4].mxu1 %v362_v23  ;;  %2915 = vmatmul.mubr.f32.gmra.mrb[4].mxu0 %v4855_v9  ;;  %v4858_v23 = vand.u32 4294901760, %v4067_v6  ;;  %v4232_v29 = vand.u32 4294901760, %v196_v1  ;;  %v402_v60 = vand.u32 4294901760, %v4188_v50  ;;  %v3164_v56 = vpack.c.bf16 %v696_v55, %v689_v25 }
  0x86   : > { %v4222_v61 = vsub.f32 %v3906_v30, %v4857_v22  ;;  %2677 = vmatprep.mubr.f32.mxu1 %v372_v36  ;;  %v411_v5 = vsub.f32 %v4157_v16, %v4859_v7  ;;  %v4860_v30 = vand.u32 4294901760, %v4170_v15  ;;  %v701_v9 = vand.u32 4294901760, %v4217_v3 }
  0x87   : > { %2917 = vmatprep.mubr.f32.mxu0 %v4858_v23  ;;  %3159 = vmatpush3.bf16.msra.mxu1 %v3156_v26  ;;  %v4861_v23 = vand.u32 4294901760, %v4173_v46  ;;  %v3260_v6 = vpack.c.bf16 %v694_v20, %v687_v38  ;;  %v4245_v50 = vand.u32 4294901760, %v197_v11  ;;  %v4862_v26 = vand.u32 4294901760, %v4070_v28 }
  0x88   : > { %3255 = vmatpush3.bf16.msra.mxu0 %v3252_v44  ;;  %v421_v36 = vsub.f32 %v4170_v15, %v4860_v30  ;;  %v708_v22 = vand.u32 4294901760, %v4222_v61  ;;  %3161 = vmatprep.subr.bf16.mxu1 %v3160_v40  ;;  %v198_v44 = vld [vmem:[%s3832_s23 + $0x98] sm:$0xff]  ;;  %v4252_v8 = vsub.f32 %v194_v62, %v4211_v12  ;;  %v4863_v55 = vand.u32 4294901760, %v4089_v4 }
  0x89   : > { %v4243_v7 = vsub.f32 %v4173_v46, %v4861_v23  ;;  %3257 = vmatprep.subr.bf16.mxu0 %v3256_v51  ;;  %2678 = vmatmul.mubr.f32.gmra.mrb[6].mxu1 %v382_v0  ;;  %v702_v23 = vsub.f32 %v4217_v3, %v701_v9  ;;  %v412_v38 = vand.u32 4294901760, %v411_v5  ;;  %v4864_v20 = vand.u32 4294901760, %v4192_v24 }
  0x8a   : > { %2918 = vmatmul.mubr.f32.gmra.mrb[6].mxu0 %v4862_v26  ;;  %v709_v63 = vsub.f32 %v4222_v61, %v708_v22  ;;  %2680 = vmatprep.mubr.f32.mxu1 %v392_v21  ;;  %v4264_v25 = vsub.f32 %v195_v59, %v4230_v52  ;;  %v4267_v62 = vsub.f32 %v196_v1, %v4232_v29  ;;  %v4269_v26 = vand.u32 4294901760, %v198_v44  ;;  %v199_v21 = vld [vmem:[%s3832_s23 + $0xa0] sm:$0xff]  ;;  %v200_v1 = vld [vmem:[%s3832_s23 + $0xa8] sm:$0xff] }
  0x8b   : > { %2920 = vmatprep.mubr.f32.mxu0 %v4863_v55  ;;  %v4261_v0 = vsub.f32 %v4192_v24, %v4864_v20  ;;  %3163 = vmatpush3.bf16.msra.mxu1 %v3160_v40  ;;  %v703_v30 = vand.u32 4294901760, %v702_v23  ;;  %v4865_v5 = vand.u32 4294901760, %v3917_v37  ;;  %v422_v20 = vand.u32 4294901760, %v421_v36 }
  0x8c   : > { %3259 = vmatpush3.bf16.msra.mxu0 %v3256_v51  ;;  %v710_v55 = vand.u32 4294901760, %v709_v63  ;;  %3165 = vmatprep.subr.bf16.mxu1 %v3164_v56  ;;  %v4278_v59 = vsub.f32 %v197_v11, %v4245_v50  ;;  %v3264_v40 = vpack.c.bf16 %v708_v22, %v701_v9  ;;  %v4866_v51 = vand.u32 4294901760, %v3929_v41 }
  0x8d   : > { %v4275_v4 = vsub.f32 %v3917_v37, %v4865_v5  ;;  %3261 = vmatprep.subr.bf16.mxu0 %v3260_v6  ;;  %2681 = vmatmul.mubr.f32.gmra.mrb[8].mxu1 %v402_v60  ;;  %v4867_v63 = vand.u32 4294901760, %v4105_v54  ;;  %v4868_v37 = vand.u32 4294901760, %v4209_v14  ;;  %v4869_v9 = vand.u32 4294901760, %v4157_v16 }
  0x8e   : > { %v4284_v28 = vsub.f32 %v3929_v41, %v4866_v51  ;;  %v3168_v5 = vpack.c.bf16 %v710_v55, %v703_v30  ;;  %2683 = vmatprep.mubr.f32.mxu1 %v412_v38  ;;  %v432_v41 = vand.u32 4294901760, %v4243_v7  ;;  %v4297_v22 = vand.u32 4294901760, %v199_v21  ;;  %v201_v51 = vld [vmem:[%s3832_s23 + $0xb0] sm:$0xff] }
  0x8f   : > { %2921 = vmatmul.mubr.f32.gmra.mrb[8].mxu0 %v4867_v63  ;;  %v451_v36 = vsub.f32 %v4209_v14, %v4868_v37  ;;  %v715_v11 = vand.u32 4294901760, %v4275_v4  ;;  %3167 = vmatpush3.bf16.msra.mxu1 %v3164_v56  ;;  %v4303_v30 = vsub.f32 %v198_v44, %v4269_v26  ;;  %v4305_v38 = vand.u32 4294901760, %v200_v1 }
  0x90   : > { %2923 = vmatprep.mubr.f32.mxu0 %v4869_v9  ;;  %4870 = vst [vmem:[#allocation38_spill] sm:$0xff] %v4297_v22  ;;  %v722_v63 = vand.u32 4294901760, %v4284_v28  ;;  %3263 = vmatpush3.bf16.msra.mxu0 %v3260_v6  ;;  %v442_v7 = vand.u32 4294901760, %v4261_v0  ;;  %v4872_v56 = vand.u32 4294901760, %v4170_v15  ;;  %v4873_v44 = vand.u32 4294901760, %v4252_v8  ;;  %v202_v0 = vld [vmem:[%s3832_s23 + $0xb8] sm:$0xff] }
  0x91   : > { %4871 = vst [vmem:[#allocation39_spill] sm:$0xff] %v4305_v38  ;;  %v716_v55 = vsub.f32 %v4275_v4, %v715_v11  ;;  %3169 = vmatprep.subr.bf16.mxu1 %v3168_v5  ;;  %3265 = vmatprep.subr.bf16.mxu0 %v3264_v40  ;;  %v452_v6 = vand.u32 4294901760, %v451_v36  ;;  %v4316_v16 = vand.u32 4294901760, %v201_v51  ;;  %v4875_v9 = vand.u32 4294901760, %v4173_v46 }
  0x92   : > { %v723_v60 = vsub.f32 %v4284_v28, %v722_v63  ;;  %v3268_v23 = vpack.c.bf16 %v722_v63, %v715_v11  ;;  %2684 = vmatmul.mubr.f32.gmra.mrb[10].mxu1 %v422_v20  ;;  %v461_v37 = vsub.f32 %v4252_v8, %v4873_v44  ;;  %v4876_v11 = vand.u32 4294901760, %v4264_v25 }
  0x93   : > { %2924 = vmatmul.mubr.f32.gmra.mrb[10].mxu0 %v4872_v56  ;;  %4874 = vst [vmem:[#allocation40_spill] sm:$0xff] %v4316_v16  ;;  %v717_v54 = vand.u32 4294901760, %v716_v55  ;;  %2686 = vmatprep.mubr.f32.mxu1 %v432_v41  ;;  %v4325_v63 = vsub.f32 %v199_v21, %v4297_v22  ;;  %v4877_v56 = vand.u32 4294901760, %v3939_v47  ;;  %v4878_v15 = vand.u32 4294901760, %v4267_v62 }
  0x94   : > { %2926 = vmatprep.mubr.f32.mxu0 %v4875_v9  ;;  %v471_v20 = vsub.f32 %v4264_v25, %v4876_v11  ;;  %v724_v36 = vand.u32 4294901760, %v723_v60  ;;  %v4335_v9 = vsub.f32 %v200_v1, %v4305_v38  ;;  %3171 = vmatpush3.bf16.msra.mxu1 %v3168_v5  ;;  %v203_v11 = vld [vmem:[%s3832_s23 + $0xc0] sm:$0xff]  ;;  %v4879_v21 = vand.u32 4294901760, %v3941_v48 }
  0x95   : > { %v728_v44 = vsub.f32 %v3939_v47, %v4877_v56  ;;  %v481_v55 = vsub.f32 %v4267_v62, %v4878_v15  ;;  %3267 = vmatpush3.bf16.msra.mxu0 %v3264_v40  ;;  %v4880_v46 = vand.u32 4294901760, %v4278_v59  ;;  %v4344_v56 = vand.u32 4294901760, %v202_v0 }
  0x96   : > { %v735_v60 = vsub.f32 %v3941_v48, %v4879_v21  ;;  %v3172_v15 = vpack.c.bf16 %v724_v36, %v717_v54  ;;  %3269 = vmatprep.subr.bf16.mxu0 %v3268_v23  ;;  %2687 = vmatmul.mubr.f32.gmra.mrb[12].mxu1 %v442_v7  ;;  %v4881_v1 = vand.u32 4294901760, %v4192_v24  ;;  %v462_v40 = vand.u32 4294901760, %v461_v37  ;;  %v204_v36 = vld [vmem:[%s3832_s23 + $0xc8] sm:$0xff]  ;;  %v205_v37 = vld [vmem:[%s3832_s23 + $0xd0] sm:$0xff] }
  0x97   : > { %v491_v47 = vsub.f32 %v4278_v59, %v4880_v46  ;;  %v729_v41 = vand.u32 4294901760, %v728_v44  ;;  %v4349_v5 = vsub.f32 %v201_v51, %v4316_v16  ;;  %2689 = vmatprep.mubr.f32.mxu1 %v452_v6  ;;  %v4882_v21 = vand.u32 4294901760, %v4209_v14 }
  0x98   : > { %2927 = vmatmul.mubr.f32.gmra.mrb[12].mxu0 %v4881_v1  ;;  %v736_v48 = vand.u32 4294901760, %v735_v60  ;;  %v472_v46 = vand.u32 4294901760, %v471_v20  ;;  %v4354_v54 = vand.u32 4294901760, %v203_v11  ;;  %v482_v22 = vand.u32 4294901760, %v481_v55  ;;  %3173 = vmatprep.subr.bf16.mxu1 %v3172_v15 }
  0x99   : > { %2929 = vmatprep.mubr.f32.mxu0 %v4882_v21  ;;  %v730_v7 = vsub.f32 %v728_v44, %v729_v41  ;;  %3271 = vmatpush3.bf16.msra.mxu0 %v3268_v23  ;;  %v492_v16 = vand.u32 4294901760, %v491_v47  ;;  %v4883_v6 = vand.u32 4294901760, %v4303_v30  ;;  %v4363_v21 = vsub.f32 %v202_v0, %v4344_v56 }
  0x9a   : > { %v737_v51 = vsub.f32 %v735_v60, %v736_v48  ;;  %v3272_v1 = vpack.c.bf16 %v736_v48, %v729_v41  ;;  %3175 = vmatpush3.bf16.msra.mxu1 %v3172_v15  ;;  %v4885_v55 = vand.u32 4294901760, %v4252_v8  ;;  %v4795_v23 = vand.u32 4294901760, %v4349_v5 }
  0x9b   : > { %v501_v20 = vsub.f32 %v4303_v30, %v4883_v6  ;;  %4884 = vst [vmem:[#allocation41_spill] sm:$0xff] %v4363_v21  ;;  %v731_v38 = vand.u32 4294901760, %v730_v7  ;;  %2690 = vmatmul.mubr.f32.gmra.mrb[14].mxu1 %v462_v40  ;;  %v4368_v24 = vand.u32 4294901760, %v204_v36  ;;  %v4372_v47 = vpack.c.bf16 %v3973_v58, %v3968_v57  ;;  %v206_v6 = vld [vmem:[%s3832_s23 + $0xd8] sm:$0xff] }
  0x9c   : > { %2930 = vmatmul.mubr.f32.gmra.mrb[14].mxu0 %v4885_v55  ;;  %v738_v41 = vand.u32 4294901760, %v737_v51  ;;  %2692 = vmatprep.mubr.f32.mxu1 %v472_v46  ;;  %v4886_v0 = vand.u32 4294901760, %v4264_v25  ;;  %v4887_v15 = vand.u32 4294901760, %v4325_v63  ;;  %v4380_v48 = vsub.f32 %v203_v11, %v4354_v54  ;;  %v207_v46 = vld [vmem:[%s3832_s23 + $0xe0] sm:$0xff] }
  0x9d   : > { %v4382_v7 = vand.u32 4294901760, %v205_v37  ;;  %v4387_v51 = vpack.c.bf16 %v4019_v34, %v4014_v32  ;;  %v4889_v57 = vand.u32 4294901760, %v4335_v9  ;;  %3273 = vmatprep.subr.bf16.mxu0 %v3272_v1  ;;  %v4399_v11 = vpack.c.bf16 %v4165_v49, %v4148_v2 }
  0x9e   : > { %2932 = vmatprep.mubr.f32.mxu0 %v4886_v0  ;;  %v511_v40 = vsub.f32 %v4325_v63, %v4887_v15  ;;  %4888 = vst [vmem:[#allocation42_spill] sm:$0xff] %v4380_v48  ;;  %v3176_v55 = vpack.c.bf16 %v738_v41, %v731_v38  ;;  %v4395_v0 = vpack.c.bf16 %v4077_v31, %v4064_v35  ;;  %v540_v15 = vand.u32 4294901760, %v4363_v21 }
  0x9f   : > { %v521_v58 = vsub.f32 %v4335_v9, %v4889_v57  ;;  %3275 = vmatpush3.bf16.msra.mxu0 %v3272_v1  ;;  %v4404_v32 = vpack.c.bf16 %v4222_v61, %v4217_v3  ;;  %v4408_v34 = vpack.c.bf16 %v4284_v28, %v4275_v4  ;;  %v4410_v38 = vpack.c.bf16 %v735_v60, %v728_v44  ;;  %v208_v60 = vld [vmem:[%s3832_s23 + $0xe8] sm:$0xff]  ;;  %v209_v1 = vld [vmem:[%s3832_s23 + $0xf0] sm:$0xff] }
  0xa0   : > { %2693 = vmatmul.mubr.f32.gmra.mrb[16].mxu1 %v482_v22  ;;  %v4890_v35 = vand.u32 4294901760, %v4267_v62  ;;  %v502_v49 = vand.u32 4294901760, %v501_v20  ;;  %v531_v2 = vsub.f32 %v4349_v5, %v4795_v23  ;;  %v4418_v31 = vsub.f32 %v204_v36, %v4368_v24  ;;  %3177 = vmatprep.subr.bf16.mxu1 %v3176_v55 }
  0xa1   : > { %v4420_v3 = vand.u32 4294901760, %v206_v6  ;;  %2695 = vmatprep.mubr.f32.mxu1 %v492_v16  ;;  %v4892_v28 = vand.u32 4294901760, %v4278_v59  ;;  %v512_v4 = vand.u32 4294901760, %v511_v40  ;;  %v550_v61 = vand.u32 4294901760, %v4380_v48  ;;  %3277 = vmatprep.subr.bf16.mxu0 %v3852_v10 }
  0xa2   : > { %2933 = vmatmul.mubr.f32.gmra.mrb[16].mxu0 %v4890_v35  ;;  %4891 = vst [vmem:[#allocation43_spill] sm:$0xff] %v4418_v31  ;;  %v4426_v22 = vsub.f32 %v205_v37, %v4382_v7  ;;  %v4428_v44 = vand.u32 4294901760, %v207_v46  ;;  %v4434_v36 = vpack.c.bf16 %v3931_v42, %v3919_v39  ;;  %v522_v16 = vand.u32 4294901760, %v521_v58  ;;  %3179 = vmatpush3.bf16.msra.mxu1 %v3176_v55 }
  0xa3   : > { %2935 = vmatprep.mubr.f32.mxu0 %v4892_v28  ;;  %v541_v20 = vsub.f32 %v4363_v21, %v540_v15  ;;  %v4894_v37 = vand.u32 4294901760, %v4303_v30  ;;  %v532_v41 = vand.u32 4294901760, %v531_v2  ;;  %v560_v40 = vand.u32 4294901760, %v4418_v31  ;;  %v210_v2 = vld [vmem:[%s3832_s23 + $0xf8] sm:$0xff] }
  0xa4   : > { %4893 = vst [vmem:[#allocation44_spill] sm:$0xff] %v4426_v22  ;;  %2696 = vmatmul.mubr.f32.gmra.mrb[18].mxu1 %v502_v49  ;;  %v4442_v57 = vsub.f32 %v206_v6, %v4420_v3  ;;  %v4444_v35 = vand.u32 4294901760, %v208_v60  ;;  %v4895_v39 = vand.u32 4294901760, %v4325_v63  ;;  %v551_v42 = vsub.f32 %v4380_v48, %v550_v61  ;;  %3181 = vmatprep.subr.bf16.mxu1 %v4434_v36 }
  0xa5   : > { %2698 = vmatprep.mubr.f32.mxu1 %v512_v4  ;;  %v570_v58 = vand.u32 4294901760, %v4426_v22  ;;  %v4451_v55 = vsub.f32 %v207_v46, %v4428_v44  ;;  %v4453_v49 = vand.u32 4294901760, %v209_v1  ;;  %v542_v6 = vand.u32 4294901760, %v541_v20 }
  0xa6   : > { %2936 = vmatmul.mubr.f32.gmra.mrb[18].mxu0 %v4894_v37  ;;  %v4896_v28 = vand.u32 4294901760, %v4335_v9  ;;  %v561_v4 = vsub.f32 %v4418_v31, %v560_v40  ;;  %v580_v37 = vand.u32 4294901760, %v4442_v57  ;;  %v4464_v23 = vand.u32 4294901760, %v210_v2 }
  0xa7   : > { %2938 = vmatprep.mubr.f32.mxu0 %v4895_v39  ;;  %v4462_v39 = vsub.f32 %v208_v60, %v4444_v35  ;;  %v4897_v46 = vand.u32 4294901760, %v4349_v5  ;;  %v552_v48 = vand.u32 4294901760, %v551_v42  ;;  %v571_v20 = vsub.f32 %v4426_v22, %v570_v58 }
  0xa8   : > { %2699 = vmatmul.mubr.f32.gmra.mrb[20].mxu1 %v522_v16  ;;  %v590_v16 = vand.u32 4294901760, %v4451_v55  ;;  %v562_v31 = vand.u32 4294901760, %v561_v4  ;;  %v581_v60 = vsub.f32 %v4442_v57, %v580_v37 }
  0xa9   : > { %2701 = vmatprep.mubr.f32.mxu1 %v532_v41  ;;  %v600_v21 = vand.u32 4294901760, %v4462_v39  ;;  %v4476_v41 = vsub.f32 %v210_v2, %v4464_v23  ;;  %v572_v42 = vand.u32 4294901760, %v571_v20 }
  0xaa   : > { %2939 = vmatmul.mubr.f32.gmra.mrb[20].mxu0 %v4896_v28  ;;  %v4471_v28 = vsub.f32 %v209_v1, %v4453_v49  ;;  %v582_v1 = vand.u32 4294901760, %v581_v60  ;;  %v4915_v60 = vld [vmem:[#allocation14_spill] sm:$0xff] }
  0xab   : > { %2941 = vmatprep.mubr.f32.mxu0 %v4897_v46  ;;  %v591_v46 = vsub.f32 %v4451_v55, %v590_v16 }
  0xac   : > { %2702 = vmatmul.mubr.f32.gmra.mrb[22].mxu1 %v542_v6  ;;  %v610_v22 = vand.u32 4294901760, %v4471_v28  ;;  %v620_v6 = vand.u32 4294901760, %v4476_v41 }
  0xad   : > { %2704 = vmatprep.mubr.f32.mxu1 %v552_v48  ;;  %v592_v4 = vand.u32 4294901760, %v591_v46  ;;  %v4917_v46 = vld [vmem:[#allocation17_spill] sm:$0xff] }
  0xae   : > { %2942 = vmatmul.mubr.f32.gmra.mrb[22].mxu0 %v540_v15  ;;  %v601_v15 = vsub.f32 %v4462_v39, %v600_v21  ;;  %v611_v2 = vsub.f32 %v4471_v28, %v610_v22 }
  0xaf   : > { %2944 = vmatprep.mubr.f32.mxu0 %v550_v61  ;;  %v621_v61 = vsub.f32 %v4476_v41, %v620_v6 }
  0xb0   : > { %2705 = vmatmul.mubr.f32.gmra.mrb[24].mxu1 %v562_v31  ;;  %v602_v48 = vand.u32 4294901760, %v601_v15  ;;  %v612_v20 = vand.u32 4294901760, %v611_v2  ;;  %v4919_v15 = vld [vmem:[#allocation24_spill] sm:$0xff]  ;;  %v4927_v2 = vld [vmem:[#allocation37_spill] sm:$0xff] }
  0xb1   : > { %2707 = vmatprep.mubr.f32.mxu1 %v572_v42  ;;  %v622_v31 = vand.u32 4294901760, %v621_v61  ;;  %v4916_v42 = vld [vmem:[#allocation16_spill] sm:$0xff] }
  0xb2   : > { %2945 = vmatmul.mubr.f32.gmra.mrb[24].mxu0 %v560_v40  ;;  %v4908_v40 = vld [vmem:[#allocation33_spill] sm:$0xff] }
  0xb3   : > { %2947 = vmatprep.mubr.f32.mxu0 %v570_v58  ;;  %v4909_v58 = vld [vmem:[#allocation36_spill] sm:$0xff] }
  0xb4   : > { %2708 = vmatmul.mubr.f32.gmra.mrb[26].mxu1 %v582_v1  ;;  %v4918_v1 = vld [vmem:[#allocation19_spill] sm:$0xff] }
  0xb5   : > { %2710 = vmatprep.mubr.f32.mxu1 %v592_v4  ;;  %v4926_v4 = vld [vmem:[#allocation35_spill] sm:$0xff] }
  0xb6   : > { %2948 = vmatmul.mubr.f32.gmra.mrb[26].mxu0 %v580_v37  ;;  %v4912_v37 = vld [vmem:[#allocation39_spill] sm:$0xff] }
  0xb7   : > { %2950 = vmatprep.mubr.f32.mxu0 %v590_v16  ;;  %v4914_v16 = vld [vmem:[#allocation11_spill] sm:$0xff] }
  0xb8   : > { %2711 = vmatmul.mubr.f32.gmra.mrb[28].mxu1 %v602_v48 }
  0xb9   : > { %2713 = vmatprep.mubr.f32.mxu1 %v612_v20 }
  0xba   : > { %2951 = vmatmul.mubr.f32.gmra.mrb[28].mxu0 %v600_v21  ;;  %v4899_v21 = vld [vmem:[#allocation22_spill] sm:$0xff] }
  0xbb   : > { %2953 = vmatprep.mubr.f32.mxu0 %v610_v22  ;;  %v4902_v22 = vld [vmem:[#allocation25_spill] sm:$0xff] }
  0xbc   : > { %2714 = vmatmul.mubr.f32.gmra.mrb[30].mxu1 %v622_v31 }
  0xbd   : > { %2748 = vmatprep.mubr.f32.mxu1 %v3871_v17 }
  0xbe   : > { %2954 = vmatmul.mubr.f32.gmra.mrb[30].mxu0 %v620_v6  ;;  %v4925_v6 = vld [vmem:[#allocation34_spill] sm:$0xff] }
  0xbf   : > { %2988 = vmatprep.mubr.f32.mxu0 %v3871_v17 }
  0xc0   : > { %2749 = vmatmul.mubr.f32.vlgmr.msra.gmra.mrb[0].mxu1 %v3910_v33 }
  0xc1   : > { %3183 = vmatpush3.bf16.msra.mxu1 %v4434_v36  ;;  %2751 = vmatprep.mubr.f32.mxu1 %v3933_v43  ;;  %v4905_v36 = vld [vmem:[#allocation31_spill] sm:$0xff] }
  0xc2   : > { %2989 = vmatmul.mubr.f32.vlgmr.msra.gmra.mrb[0].mxu0 %v3910_v33  ;;  %3185 = vmatprep.subr.bf16.mxu1 %v4372_v47 }
  0xc3   : > { %3279 = vmatpush3.bf16.msra.mxu0 %v3852_v10  ;;  %2991 = vmatprep.mubr.f32.mxu0 %v3933_v43  ;;  %v4898_v10 = vld [vmem:[#allocation20_spill] sm:$0xff] }
  0xc4   : > { %3281 = vmatprep.subr.bf16.mxu0 %v3860_v13  ;;  %2752 = vmatmul.mubr.f32.gmra.mrb[2].mxu1 %v3936_v45 }
  0xc5   : > { %2754 = vmatprep.mubr.f32.mxu1 %v3956_v53  ;;  %3187 = vmatpush3.bf16.msra.mxu1 %v4372_v47  ;;  %v4900_v47 = vld [vmem:[#allocation12_spill] sm:$0xff] }
  0xc6   : > { %2992 = vmatmul.mubr.f32.gmra.mrb[2].mxu0 %v3936_v45  ;;  %3189 = vmatprep.subr.bf16.mxu1 %v4387_v51 }
  0xc7   : > { %2994 = vmatprep.mubr.f32.mxu0 %v3956_v53  ;;  %3283 = vmatpush3.bf16.msra.mxu0 %v3860_v13  ;;  %v4901_v13 = vld [vmem:[#allocation23_spill] sm:$0xff] }
  0xc8   : > { %3285 = vmatprep.subr.bf16.mxu0 %v3879_v18  ;;  %2755 = vmatmul.mubr.f32.gmra.mrb[4].mxu1 %v4898_v10 }
  0xc9   : > { %2757 = vmatprep.mubr.f32.mxu1 %v4899_v21  ;;  %3191 = vmatpush3.bf16.msra.mxu1 %v4387_v51  ;;  %v4903_v51 = vld [vmem:[#allocation13_spill] sm:$0xff] }
  0xca   : > { %2995 = vmatmul.mubr.f32.gmra.mrb[4].mxu0 %v4898_v10  ;;  %3193 = vmatprep.subr.bf16.mxu1 %v4395_v0 }
  0xcb   : > { %2997 = vmatprep.mubr.f32.mxu0 %v4899_v21  ;;  %3287 = vmatpush3.bf16.msra.mxu0 %v3879_v18  ;;  %v4904_v18 = vld [vmem:[#allocation28_spill] sm:$0xff] }
  0xcc   : > { %3289 = vmatprep.subr.bf16.mxu0 %v4900_v47  ;;  %2758 = vmatmul.mubr.f32.gmra.mrb[6].mxu1 %v4901_v13 }
  0xcd   : > { %2760 = vmatprep.mubr.f32.mxu1 %v4902_v22  ;;  %3195 = vmatpush3.bf16.msra.mxu1 %v4395_v0  ;;  %v4906_v0 = vld [vmem:[#allocation15_spill] sm:$0xff] }
  0xce   : > { %2998 = vmatmul.mubr.f32.gmra.mrb[6].mxu0 %v4901_v13  ;;  %3197 = vmatprep.subr.bf16.mxu1 %v4399_v11 }
  0xcf   : > { %3000 = vmatprep.mubr.f32.mxu0 %v4902_v22  ;;  %3291 = vmatpush3.bf16.msra.mxu0 %v4900_v47 }
  0xd0   : > { %3293 = vmatprep.subr.bf16.mxu0 %v4903_v51  ;;  %2761 = vmatmul.mubr.f32.gmra.mrb[8].mxu1 %v4904_v18 }
  0xd1   : > { %2763 = vmatprep.mubr.f32.mxu1 %v4905_v36  ;;  %3199 = vmatpush3.bf16.msra.mxu1 %v4399_v11  ;;  %v4907_v11 = vld [vmem:[#allocation18_spill] sm:$0xff] }
  0xd2   : > { %3001 = vmatmul.mubr.f32.gmra.mrb[8].mxu0 %v4904_v18  ;;  %3201 = vmatprep.subr.bf16.mxu1 %v4404_v32 }
  0xd3   : > { %3003 = vmatprep.mubr.f32.mxu0 %v4905_v36  ;;  %3295 = vmatpush3.bf16.msra.mxu0 %v4903_v51 }
  0xd4   : > { %3297 = vmatprep.subr.bf16.mxu0 %v4906_v0  ;;  %2764 = vmatmul.mubr.f32.gmra.mrb[10].mxu1 %v4123_v27 }
  0xd5   : > { %2766 = vmatprep.mubr.f32.mxu1 %v4125_v19  ;;  %3203 = vmatpush3.bf16.msra.mxu1 %v4404_v32  ;;  %v4910_v32 = vld [vmem:[#allocation21_spill] sm:$0xff] }
  0xd6   : > { %3004 = vmatmul.mubr.f32.gmra.mrb[10].mxu0 %v4123_v27  ;;  %3205 = vmatprep.subr.bf16.mxu1 %v4408_v34 }
  0xd7   : > { %3006 = vmatprep.mubr.f32.mxu0 %v4125_v19  ;;  %3299 = vmatpush3.bf16.msra.mxu0 %v4906_v0 }
  0xd8   : > { %3301 = vmatprep.subr.bf16.mxu0 %v4907_v11  ;;  %2767 = vmatmul.mubr.f32.gmra.mrb[12].mxu1 %v4908_v40 }
  0xd9   : > { %2769 = vmatprep.mubr.f32.mxu1 %v4909_v58  ;;  %3207 = vmatpush3.bf16.msra.mxu1 %v4408_v34  ;;  %v4911_v34 = vld [vmem:[#allocation38_spill] sm:$0xff] }
  0xda   : > { %3007 = vmatmul.mubr.f32.gmra.mrb[12].mxu0 %v4908_v40  ;;  %3209 = vmatprep.subr.bf16.mxu1 %v4410_v38 }
  0xdb   : > { %3009 = vmatprep.mubr.f32.mxu0 %v4909_v58  ;;  %3303 = vmatpush3.bf16.msra.mxu0 %v4907_v11 }
  0xdc   : > { %3305 = vmatprep.subr.bf16.mxu0 %v4910_v32  ;;  %2770 = vmatmul.mubr.f32.gmra.mrb[14].mxu1 %v4211_v12 }
  0xdd   : > { %2772 = vmatprep.mubr.f32.mxu1 %v4230_v52  ;;  %3211 = vmatpush3.bf16.msra.mxu1 %v4410_v38  ;;  %v4913_v38 = vld [vmem:[#allocation40_spill] sm:$0xff] }
  0xde   : > { %3010 = vmatmul.mubr.f32.gmra.mrb[14].mxu0 %v4211_v12 }
  0xdf   : > { %3012 = vmatprep.mubr.f32.mxu0 %v4230_v52  ;;  %3307 = vmatpush3.bf16.msra.mxu0 %v4910_v32 }
  0xe0   : > { %2773 = vmatmul.mubr.f32.gmra.mrb[16].mxu1 %v4232_v29 }
  0xe1   : > { %2775 = vmatprep.mubr.f32.mxu1 %v4245_v50 }
  0xe2   : > { %3013 = vmatmul.mubr.f32.gmra.mrb[16].mxu0 %v4232_v29 }
  0xe3   : > { %3015 = vmatprep.mubr.f32.mxu0 %v4245_v50 }
  0xe4   : > { %2776 = vmatmul.mubr.f32.gmra.mrb[18].mxu1 %v4269_v26 }
  0xe5   : > { %2778 = vmatprep.mubr.f32.mxu1 %v4911_v34 }
  0xe6   : > { %3016 = vmatmul.mubr.f32.gmra.mrb[18].mxu0 %v4269_v26 }
  0xe7   : > { %3018 = vmatprep.mubr.f32.mxu0 %v4911_v34 }
  0xe8   : > { %2779 = vmatmul.mubr.f32.gmra.mrb[20].mxu1 %v4912_v37 }
  0xe9   : > { %2781 = vmatprep.mubr.f32.mxu1 %v4913_v38 }
  0xea   : > { %3019 = vmatmul.mubr.f32.gmra.mrb[20].mxu0 %v4912_v37 }
  0xeb   : > { %3021 = vmatprep.mubr.f32.mxu0 %v4913_v38 }
  0xec   : > { %2782 = vmatmul.mubr.f32.gmra.mrb[22].mxu1 %v4344_v56 }
  0xed   : > { %2784 = vmatprep.mubr.f32.mxu1 %v4354_v54 }
  0xee   : > { %3022 = vmatmul.mubr.f32.gmra.mrb[22].mxu0 %v4344_v56 }
  0xef   : > { %3024 = vmatprep.mubr.f32.mxu0 %v4354_v54 }
  0xf0   : > { %2785 = vmatmul.mubr.f32.gmra.mrb[24].mxu1 %v4368_v24 }
  0xf1   : > { %2787 = vmatprep.mubr.f32.mxu1 %v4382_v7 }
  0xf2   : > { %3025 = vmatmul.mubr.f32.gmra.mrb[24].mxu0 %v4368_v24 }
  0xf3   : > { %3027 = vmatprep.mubr.f32.mxu0 %v4382_v7 }
  0xf4   : > { %2788 = vmatmul.mubr.f32.gmra.mrb[26].mxu1 %v4420_v3 }
  0xf5   : > { %2790 = vmatprep.mubr.f32.mxu1 %v4428_v44 }
  0xf6   : > { %3028 = vmatmul.mubr.f32.gmra.mrb[26].mxu0 %v4420_v3 }
  0xf7   : > { %3030 = vmatprep.mubr.f32.mxu0 %v4428_v44 }
  0xf8   : > { %2791 = vmatmul.mubr.f32.gmra.mrb[28].mxu1 %v4444_v35 }
  0xf9   : > { %2793 = vmatprep.mubr.f32.mxu1 %v4453_v49 }
  0xfa   : > { %3031 = vmatmul.mubr.f32.gmra.mrb[28].mxu0 %v4444_v35 }
  0xfb   : > { %3033 = vmatprep.mubr.f32.mxu0 %v4453_v49 }
  0xfc   : > { %2794 = vmatmul.mubr.f32.gmra.mrb[30].mxu1 %v4464_v23 }
  0xfd   : > { %2828 = vmatprep.mubr.f32.mxu1 %v4914_v16 }
  0xfe   : > { %3034 = vmatmul.mubr.f32.gmra.mrb[30].mxu0 %v4464_v23 }
  0xff   : > { %3068 = vmatprep.mubr.f32.mxu0 %v3871_v17  ;;  %v4920_v17 = vld [vmem:[#allocation26_spill] sm:$0xff] }
 0x100   : > { %2829 = vmatmul.mubr.f32.vlgmr.msra.gmra.mrb[0].mxu1 %v4915_v60 }
 0x101   : > { %2831 = vmatprep.mubr.f32.mxu1 %v4916_v42 }
 0x102   : > { %3069 = vmatmul.mubr.f32.vlgmr.msra.gmra.mrb[0].mxu0 %v3910_v33  ;;  %v4921_v33 = vld [vmem:[#allocation27_spill] sm:$0xff] }
 0x103   : > { %3071 = vmatprep.mubr.f32.mxu0 %v3933_v43  ;;  %v4922_v43 = vld [vmem:[#allocation29_spill] sm:$0xff] }
 0x104   : > { %2832 = vmatmul.mubr.f32.gmra.mrb[2].mxu1 %v4917_v46 }
 0x105   : > { %2834 = vmatprep.mubr.f32.mxu1 %v4918_v1 }
 0x106   : > { %3072 = vmatmul.mubr.f32.gmra.mrb[2].mxu0 %v3936_v45  ;;  %v4923_v45 = vld [vmem:[#allocation30_spill] sm:$0xff] }
 0x107   : > { %3074 = vmatprep.mubr.f32.mxu0 %v3956_v53  ;;  %v4924_v53 = vld [vmem:[#allocation32_spill] sm:$0xff] }
 0x108   : > { %2835 = vmatmul.mubr.f32.gmra.mrb[4].mxu1 %v4919_v15 }
 0x109   : > { %2837 = vmatprep.mubr.f32.mxu1 %v4920_v17 }
 0x10a   : > { %3075 = vmatmul.mubr.f32.gmra.mrb[4].mxu0 %v4898_v10 }
 0x10b   : > { %3077 = vmatprep.mubr.f32.mxu0 %v4899_v21 }
 0x10c   : > { %2838 = vmatmul.mubr.f32.gmra.mrb[6].mxu1 %v4921_v33 }
 0x10d   : > { %2840 = vmatprep.mubr.f32.mxu1 %v4922_v43 }
 0x10e   : > { %3078 = vmatmul.mubr.f32.gmra.mrb[6].mxu0 %v4901_v13 }
 0x10f   : > { %3080 = vmatprep.mubr.f32.mxu0 %v4902_v22 }
 0x110   : > { %2841 = vmatmul.mubr.f32.gmra.mrb[8].mxu1 %v4923_v45 }
 0x111   : > { %2843 = vmatprep.mubr.f32.mxu1 %v4924_v53 }
 0x112   : > { %3081 = vmatmul.mubr.f32.gmra.mrb[8].mxu0 %v4904_v18 }
 0x113   : > { %3083 = vmatprep.mubr.f32.mxu0 %v4905_v36 }
 0x114   : > { %2844 = vmatmul.mubr.f32.gmra.mrb[10].mxu1 %v4925_v6 }
 0x115   : > { %2846 = vmatprep.mubr.f32.mxu1 %v4926_v4 }
 0x116   : > { %3084 = vmatmul.mubr.f32.gmra.mrb[10].mxu0 %v4123_v27  ;;  %v4928_v27 = vld [vmem:[#allocation41_spill] sm:$0xff] }
 0x117   : > { %3086 = vmatprep.mubr.f32.mxu0 %v4125_v19  ;;  %v4930_v19 = vld [vmem:[#allocation43_spill] sm:$0xff] }
 0x118   : > { %2847 = vmatmul.mubr.f32.gmra.mrb[12].mxu1 %v4927_v2 }
 0x119   : > { %2849 = vmatprep.mubr.f32.mxu1 %v4209_v14 }
 0x11a   : > { %3087 = vmatmul.mubr.f32.gmra.mrb[12].mxu0 %v4908_v40 }
 0x11b   : > { %3089 = vmatprep.mubr.f32.mxu0 %v4909_v58 }
 0x11c   : > { %2850 = vmatmul.mubr.f32.gmra.mrb[14].mxu1 %v4252_v8  ;;  %v4929_v8 = vld [vmem:[#allocation42_spill] sm:$0xff] }
 0x11d   : > { %2852 = vmatprep.mubr.f32.mxu1 %v4264_v25 }
 0x11e   : > { %3090 = vmatmul.mubr.f32.gmra.mrb[14].mxu0 %v4211_v12  ;;  %v4931_v12 = vld [vmem:[#allocation44_spill] sm:$0xff] }
 0x11f   : > { %3092 = vmatprep.mubr.f32.mxu0 %v4230_v52 }
 0x120   : > { %2853 = vmatmul.mubr.f32.gmra.mrb[16].mxu1 %v4267_v62 }
 0x121   : > { %2855 = vmatprep.mubr.f32.mxu1 %v4278_v59 }
 0x122   : > { %3093 = vmatmul.mubr.f32.gmra.mrb[16].mxu0 %v4232_v29 }
 0x123   : > { %3095 = vmatprep.mubr.f32.mxu0 %v4245_v50 }
 0x124   : > { %2856 = vmatmul.mubr.f32.gmra.mrb[18].mxu1 %v4303_v30 }
 0x125   : > { %2858 = vmatprep.mubr.f32.mxu1 %v4325_v63 }
 0x126   : > { %3096 = vmatmul.mubr.f32.gmra.mrb[18].mxu0 %v4269_v26 }
 0x127   : > { %3098 = vmatprep.mubr.f32.mxu0 %v4911_v34 }
 0x128   : > { %2859 = vmatmul.mubr.f32.gmra.mrb[20].mxu1 %v4335_v9 }
 0x129   : > { %2861 = vmatprep.mubr.f32.mxu1 %v4349_v5 }
 0x12a   : > { %3099 = vmatmul.mubr.f32.gmra.mrb[20].mxu0 %v4912_v37 }
 0x12b   : > { %3101 = vmatprep.mubr.f32.mxu0 %v4913_v38 }
 0x12c   : > { %2862 = vmatmul.mubr.f32.gmra.mrb[22].mxu1 %v4928_v27 }
 0x12d   : > { %2864 = vmatprep.mubr.f32.mxu1 %v4929_v8 }
 0x12e   : > { %3102 = vmatmul.mubr.f32.gmra.mrb[22].mxu0 %v4344_v56 }
 0x12f   : > { %3104 = vmatprep.mubr.f32.mxu0 %v4354_v54 }
 0x130   : > { %2865 = vmatmul.mubr.f32.gmra.mrb[24].mxu1 %v4930_v19 }
 0x131   : > { %2867 = vmatprep.mubr.f32.mxu1 %v4931_v12 }
 0x132   : > { %3105 = vmatmul.mubr.f32.gmra.mrb[24].mxu0 %v4368_v24 }
 0x133   : > { %3107 = vmatprep.mubr.f32.mxu0 %v4382_v7 }
 0x134   : > { %2868 = vmatmul.mubr.f32.gmra.mrb[26].mxu1 %v4442_v57 }
 0x135   : > { %2870 = vmatprep.mubr.f32.mxu1 %v4451_v55 }
 0x136   : > { %3108 = vmatmul.mubr.f32.gmra.mrb[26].mxu0 %v4420_v3 }
 0x137   : > { %3110 = vmatprep.mubr.f32.mxu0 %v4428_v44 }
 0x138   : > { %2871 = vmatmul.mubr.f32.gmra.mrb[28].mxu1 %v4462_v39 }
 0x139   : > { %2873 = vmatprep.mubr.f32.mxu1 %v4471_v28 }
 0x13a   : > { %3111 = vmatmul.mubr.f32.gmra.mrb[28].mxu0 %v4444_v35 }
 0x13b   : > { %3113 = vmatprep.mubr.f32.mxu0 %v4453_v49 }
 0x13c   : > { %2874 = vmatmul.mubr.f32.gmra.mrb[30].mxu1 %v4476_v41 }
 0x13e   : > { %3114 = vmatmul.mubr.f32.gmra.mrb[30].mxu0 %v4464_v23 }
 0x1d3   : > { %v2830_v24 = vpop.f32.mrb[0].mxu1 }
 0x1d4   : > { %v1065_v29 = vpop.f32.mrb[1].mxu1 }
 0x1d5   : > { %v3070_v14 = vpop.f32.mrb[0].mxu0 }
 0x1d6   : > { %v3308_v52 = vadd.f32 %v3070_v14, %v2830_v24  ;;  %v2011_v50 = vpop.f32.mrb[1].mxu0 }
 0x1d7   : > { %v3309_v25 = vadd.f32 %v2011_v50, %v1065_v29  ;;  %v2833_v62 = vpop.f32.mrb[2].mxu1 }
 0x1d8   : > { %2202 = vst [vmem:[%s4644_s15 + $0x8] sm:$0xff] %v3308_v52  ;;  %v1079_v30 = vpop.f32.mrb[3].mxu1 }
 0x1d9   : > { %2201 = vst [vmem:[%s4644_s15] sm:$0xff] %v3309_v25  ;;  %v3073_v26 = vpop.f32.mrb[2].mxu0 }
 0x1da   : > { %v3310_v59 = vadd.f32 %v3073_v26, %v2833_v62  ;;  %v2023_v63 = vpop.f32.mrb[3].mxu0 }
 0x1db   : > { %v3311_v9 = vadd.f32 %v2023_v63, %v1079_v30  ;;  %v2836_v56 = vpop.f32.mrb[4].mxu1 }
 0x1dc   : > { %2204 = vst [vmem:[%s4644_s15 + $0x18] sm:$0xff] %v3310_v59  ;;  %v1093_v23 = vpop.f32.mrb[5].mxu1 }
 0x1dd   : > { %2203 = vst [vmem:[%s4644_s15 + $0x10] sm:$0xff] %v3311_v9  ;;  %v3076_v5 = vpop.f32.mrb[4].mxu0 }
 0x1de   : > { %v3312_v54 = vadd.f32 %v3076_v5, %v2836_v56  ;;  %v2035_v7 = vpop.f32.mrb[5].mxu0 }
 0x1df   : > { %v3313_v3 = vadd.f32 %v2035_v7, %v1093_v23  ;;  %v2839_v44 = vpop.f32.mrb[6].mxu1 }
 0x1e0   : > { %2206 = vst [vmem:[%s4644_s15 + $0x28] sm:$0xff] %v3312_v54  ;;  %v1107_v55 = vpop.f32.mrb[7].mxu1 }
 0x1e1   : > { %2205 = vst [vmem:[%s4644_s15 + $0x20] sm:$0xff] %v3313_v3  ;;  %v3079_v57 = vpop.f32.mrb[6].mxu0 }
 0x1e2   : > { %v3314_v35 = vadd.f32 %v3079_v57, %v2839_v44  ;;  %v2047_v49 = vpop.f32.mrb[7].mxu0 }
 0x1e3   : > { %v3315_v39 = vadd.f32 %v2047_v49, %v1107_v55  ;;  %v2842_v28 = vpop.f32.mrb[8].mxu1 }
 0x1e4   : > { %2208 = vst [vmem:[%s4644_s15 + $0x38] sm:$0xff] %v3314_v35  ;;  %v1121_v61 = vpop.f32.mrb[9].mxu1 }
 0x1e5   : > { %2207 = vst [vmem:[%s4644_s15 + $0x30] sm:$0xff] %v3315_v39  ;;  %v3082_v41 = vpop.f32.mrb[8].mxu0 }
 0x1e6   : > { %v3316_v48 = vadd.f32 %v3082_v41, %v2842_v28  ;;  %v2059_v20 = vpop.f32.mrb[9].mxu0 }
 0x1e7   : > { %v3317_v31 = vadd.f32 %v2059_v20, %v1121_v61  ;;  %v2845_v10 = vpop.f32.mrb[10].mxu1 }
 0x1e8   : > { %2210 = vst [vmem:[%s4644_s15 + $0x48] sm:$0xff] %v3316_v48  ;;  %v1135_v13 = vpop.f32.mrb[11].mxu1 }
 0x1e9   : > { %2209 = vst [vmem:[%s4644_s15 + $0x40] sm:$0xff] %v3317_v31  ;;  %v3085_v21 = vpop.f32.mrb[10].mxu0 }
 0x1ea   : > { %v3318_v47 = vadd.f32 %v3085_v21, %v2845_v10  ;;  %v2071_v22 = vpop.f32.mrb[11].mxu0 }
 0x1eb   : > { %v3319_v51 = vadd.f32 %v2071_v22, %v1135_v13  ;;  %v2848_v18 = vpop.f32.mrb[12].mxu1 }
 0x1ec   : > { %2212 = vst [vmem:[%s4644_s15 + $0x58] sm:$0xff] %v3318_v47  ;;  %v1149_v11 = vpop.f32.mrb[13].mxu1 }
 0x1ed   : > { %2211 = vst [vmem:[%s4644_s15 + $0x50] sm:$0xff] %v3319_v51  ;;  %v3088_v36 = vpop.f32.mrb[12].mxu0 }
 0x1ee   : > { %v3320_v0 = vadd.f32 %v3088_v36, %v2848_v18  ;;  %v2083_v40 = vpop.f32.mrb[13].mxu0 }
 0x1ef   : > { %v3321_v58 = vadd.f32 %v2083_v40, %v1149_v11  ;;  %v2851_v32 = vpop.f32.mrb[14].mxu1 }
 0x1f0   : > { %2214 = vst [vmem:[%s4644_s15 + $0x68] sm:$0xff] %v3320_v0  ;;  %v1163_v38 = vpop.f32.mrb[15].mxu1 }
 0x1f1   : > { %2213 = vst [vmem:[%s4644_s15 + $0x60] sm:$0xff] %v3321_v58  ;;  %v3091_v34 = vpop.f32.mrb[14].mxu0 }
 0x1f2   : > { %v3322_v37 = vadd.f32 %v3091_v34, %v2851_v32  ;;  %v2095_v16 = vpop.f32.mrb[15].mxu0 }
 0x1f3   : > { %v3323_v60 = vadd.f32 %v2095_v16, %v1163_v38  ;;  %v2854_v42 = vpop.f32.mrb[16].mxu1 }
 0x1f4   : > { %2216 = vst [vmem:[%s4644_s15 + $0x78] sm:$0xff] %v3322_v37  ;;  %v1177_v15 = vpop.f32.mrb[17].mxu1 }
 0x1f5   : > { %2215 = vst [vmem:[%s4644_s15 + $0x70] sm:$0xff] %v3323_v60  ;;  %v3094_v46 = vpop.f32.mrb[16].mxu0 }
 0x1f6   : > { %v3324_v1 = vadd.f32 %v3094_v46, %v2854_v42  ;;  %v2107_v17 = vpop.f32.mrb[17].mxu0 }
 0x1f7   : > { %v3325_v33 = vadd.f32 %v2107_v17, %v1177_v15  ;;  %v2857_v43 = vpop.f32.mrb[18].mxu1 }
 0x1f8   : > { %2218 = vst [vmem:[%s4644_s15 + $0x88] sm:$0xff] %v3324_v1  ;;  %v1191_v6 = vpop.f32.mrb[19].mxu1 }
 0x1f9   : > { %2217 = vst [vmem:[%s4644_s15 + $0x80] sm:$0xff] %v3325_v33  ;;  %v3097_v45 = vpop.f32.mrb[18].mxu0 }
 0x1fa   : > { %v3326_v53 = vadd.f32 %v3097_v45, %v2857_v43  ;;  %v2119_v4 = vpop.f32.mrb[19].mxu0 }
 0x1fb   : > { %v3327_v2 = vadd.f32 %v2119_v4, %v1191_v6  ;;  %v2860_v27 = vpop.f32.mrb[20].mxu1 }
 0x1fc   : > { %2220 = vst [vmem:[%s4644_s15 + $0x98] sm:$0xff] %v3326_v53  ;;  %v1205_v12 = vpop.f32.mrb[21].mxu1 }
 0x1fd   : > { %2219 = vst [vmem:[%s4644_s15 + $0x90] sm:$0xff] %v3327_v2  ;;  %v3100_v8 = vpop.f32.mrb[20].mxu0 }
 0x1fe   : > { %v3328_v19 = vadd.f32 %v3100_v8, %v2860_v27  ;;  %v2131_v24 = vpop.f32.mrb[21].mxu0 }
 0x1ff   : > { %v3329_v14 = vadd.f32 %v2131_v24, %v1205_v12  ;;  %v2863_v52 = vpop.f32.mrb[22].mxu1 }
 0x200   : > { %2222 = vst [vmem:[%s4644_s15 + $0xa8] sm:$0xff] %v3328_v19  ;;  %v1219_v25 = vpop.f32.mrb[23].mxu1 }
 0x201   : > { %2221 = vst [vmem:[%s4644_s15 + $0xa0] sm:$0xff] %v3329_v14  ;;  %v3103_v29 = vpop.f32.mrb[22].mxu0 }
 0x202   : > { %v3330_v50 = vadd.f32 %v3103_v29, %v2863_v52  ;;  %v2143_v62 = vpop.f32.mrb[23].mxu0 }
 0x203   : > { %v3331_v26 = vadd.f32 %v2143_v62, %v1219_v25  ;;  %v2866_v59 = vpop.f32.mrb[24].mxu1 }
 0x204   : > { %2224 = vst [vmem:[%s4644_s15 + $0xb8] sm:$0xff] %v3330_v50  ;;  %v1233_v9 = vpop.f32.mrb[25].mxu1 }
 0x205   : > { %2223 = vst [vmem:[%s4644_s15 + $0xb0] sm:$0xff] %v3331_v26  ;;  %v3106_v30 = vpop.f32.mrb[24].mxu0 }
 0x206   : > { %v3332_v63 = vadd.f32 %v3106_v30, %v2866_v59  ;;  %v2155_v56 = vpop.f32.mrb[25].mxu0 }
 0x207   : > { %v3333_v5 = vadd.f32 %v2155_v56, %v1233_v9  ;;  %v2869_v54 = vpop.f32.mrb[26].mxu1 }
 0x208   : > { %2226 = vst [vmem:[%s4644_s15 + $0xc8] sm:$0xff] %v3332_v63  ;;  %v1247_v3 = vpop.f32.mrb[27].mxu1 }
 0x209   : > { %2225 = vst [vmem:[%s4644_s15 + $0xc0] sm:$0xff] %v3333_v5  ;;  %v3109_v23 = vpop.f32.mrb[26].mxu0 }
 0x20a   : > { %v3334_v7 = vadd.f32 %v3109_v23, %v2869_v54  ;;  %v2167_v44 = vpop.f32.mrb[27].mxu0 }
 0x20b   : > { %v3335_v57 = vadd.f32 %v2167_v44, %v1247_v3  ;;  %v2872_v35 = vpop.f32.mrb[28].mxu1 }
 0x20c   : > { %2228 = vst [vmem:[%s4644_s15 + $0xd8] sm:$0xff] %v3334_v7  ;;  %v1261_v39 = vpop.f32.mrb[29].mxu1 }
 0x20d   : > { %2227 = vst [vmem:[%s4644_s15 + $0xd0] sm:$0xff] %v3335_v57  ;;  %v3112_v55 = vpop.f32.mrb[28].mxu0 }
 0x20e   : > { %v3336_v49 = vadd.f32 %v3112_v55, %v2872_v35  ;;  %v2179_v28 = vpop.f32.mrb[29].mxu0 }
 0x20f   : > { %v3337_v41 = vadd.f32 %v2179_v28, %v1261_v39  ;;  %v2875_v48 = vpop.f32.mrb[30].mxu1 }
 0x210   : > { %2230 = vst [vmem:[%s4644_s15 + $0xe8] sm:$0xff] %v3336_v49  ;;  %v1275_v31 = vpop.f32.mrb[31].mxu1 }
 0x211   : > { %2229 = vst [vmem:[%s4644_s15 + $0xe0] sm:$0xff] %v3337_v41  ;;  %v3115_v61 = vpop.f32.mrb[30].mxu0 }
 0x212   : > { %v3338_v20 = vadd.f32 %v3115_v61, %v2875_v48  ;;  %v2191_v10 = vpop.f32.mrb[31].mxu0 }
 0x213   : > { %v3339_v21 = vadd.f32 %v2191_v10, %v1275_v31 }
 0x214   : > { %2232 = vst [vmem:[%s4644_s15 + $0xf8] sm:$0xff] %v3338_v20 }
 0x215   : > { %2231 = vst [vmem:[%s4644_s15 + $0xf0] sm:$0xff] %v3339_v21 }
 0x216   : > { %3600 = shalt.err (!%p3597_p7)
}
 0x217   : > { %s3601_s20 = scalar_lea.hbm %s4681_s22, 4096  ;;  %s3605_s25 = scalar_lea.hbm %s4731_s2, 8192 }
 0x218   : > { %p3602_p9 = scmp.ne.s32.totalorder %s4681_s22, %s3601_s20  ;;  %p3606_p5 = scmp.lt.u32.totalorder %s4681_s22, %s4731_s2 }
 0x219   : > { %p3607_p11 = scmp.lt.u32.totalorder %s3605_s25, %s3601_s20  ;;  %p3609_p4 = scmp.lt.u32.totalorder %s3601_s20, %s4681_s22 }
 0x21a   : > { %p3603_p1 = pnand %p3602_p9, %p3775_p12 }
 0x21b   : > { %p3608_p2 = por %p3607_p11, %p3606_p5 }
 0x21c   : > { %p3604_p0 = pneg %p3603_p1 }
 0x21d   : > { %p3610_p6 = por %p3609_p4, %p3608_p2 }
 0x21f   : > { %p3611_p8 = pnand %p3610_p6, %p3604_p0 }
 0x221   : > { %3614 = shalt.err (!%p3611_p8)
}
 0x222   : > { %s3664_s30 = smov 128   ;;  %s3665_s23 = smov 8  }
 0x223   : > { %3474 = dma.vmem_to_hbm [thread:$0]  (%p3775_p12), %s4683_s4, 4096, %s4681_s22, %s2234_s13, %s3664_s30, %s3664_s30, %s3665_s23  }
 0x224 PF: > { %s2262_s15 = sand.u32 1, %s3645_s9   ;;  %p4932_p10 = scmp.ne.s32.totalorder %s4801_s16, 0 }
 0x225   : > { %p4933_p13 = scmp.ge.s32.totalorder %s3657_s12, 2  ;;  %s2263_s17 = scalar_lea.sflag [#allocation4], %s2262_s15 }
 0x227   : > { %p3485_p3 = pnand %p4933_p13, %p4932_p10 }
 0x229   : > { %3640 = dma.done.wait (!%p3485_p3), %s2263_s17, 4096  }
 0x22a   : > { %3642 = vsyncadd (!%p3485_p3), %s2263_s17, 4294963200  ;;  %p16_p7 = scmp.ge.s32.totalorder %s3737_s21, 4   ;;  %s4934_s9 = smov %s3649_s10 }
 0x22b   : > { %s4935_s10 = smov %s3653_s11  ;;  %s4936_s11 = smov %s3771_s8 }
 0x22c   : > { %s4937_s12 = smov %s3737_s21  ;;  %18 = sbr.rel (!%p16_p7) target bundleno = 6 (0x6), region = 77 }
 0x233   :  { %2268 = vsyncpa [#allocation3], 1 }
 0x234   :  { %2270 = vsyncpa [#allocation3 + $0x1], 1 }
 0x235   :  { %2271 = vsyncpa [#allocation6], 1 }
 0x236   :  { %2272 = vsyncpa [#allocation4], 1 }
 0x237   :  { %2274 = vsyncpa [#allocation4 + $0x1], 1 }

</bundles_post_ra>
